<compile_context>
chip_gen: v6e
topology: v6e:2x2x1
jax: 0.10.0
libtpu: 0.0.40
codegen_flags: <defaults>
</compile_context>

<pallas_src>
import math
import functools

import jax
import jax.numpy as jnp
from jax import lax
from jax.experimental import pallas as pl
from jax.experimental.pallas import tpu as pltpu

_EPS = 1e-5  # nn.LayerNorm default


# ----------------------------------------------------------------------------
# Tiling helpers
# ----------------------------------------------------------------------------
def _row_tile(M):
    """Largest row tile < M (multiple of 8) dividing M; else the full M."""
    for t in (256, 128, 64, 32, 16, 8):
        if t < M and M % t == 0:
            return t
    return M


def _col_tile(N):
    """Lane-dense column tile: multiple of 128 if possible, else full N."""
    for t in (512, 256, 128):
        if N % t == 0:
            return t
    return N


# ----------------------------------------------------------------------------
# Kernels
# ----------------------------------------------------------------------------
def posenc_kernel(x_ref, pe_ref, o_ref, *, scale):
    # x: (S, D) for one batch, pe: (S, D)
    o_ref[...] = (x_ref[...] * scale + pe_ref[...]).astype(o_ref.dtype)


def layernorm_kernel(x_ref, g_ref, b_ref, o_ref, *, eps):
    x = x_ref[...].astype(jnp.float32)                      # (tm, D)
    mu = jnp.mean(x, axis=-1, keepdims=True)
    xc = x - mu
    var = jnp.mean(xc * xc, axis=-1, keepdims=True)
    y = xc * lax.rsqrt(var + eps) * g_ref[...] + b_ref[...]
    o_ref[...] = y.astype(o_ref.dtype)


def ln_matmul_kernel(x_ref, g_ref, b_ref, w_ref, bias_ref, o_ref, *, eps, activation):
    # Fused LayerNorm(x) @ W + bias [+ ReLU]; W is (K, tn) so no transpose.
    x = x_ref[...].astype(jnp.float32)                      # (tm, K)
    mu = jnp.mean(x, axis=-1, keepdims=True)
    xc = x - mu
    var = jnp.mean(xc * xc, axis=-1, keepdims=True)
    y = xc * lax.rsqrt(var + eps) * g_ref[...] + b_ref[...]
    acc = jnp.dot(y, w_ref[...], preferred_element_type=jnp.float32) + bias_ref[...]
    if activation == "relu":
        acc = jnp.maximum(acc, 0.0)
    o_ref[...] = acc.astype(o_ref.dtype)


def matmul_residual_kernel(x_ref, w_ref, bias_ref, res_ref, o_ref):
    # o = x @ W + bias + residual  (W already (K, tn): no transpose)
    acc = jnp.dot(x_ref[...], w_ref[...], preferred_element_type=jnp.float32)
    acc = acc + bias_ref[...] + res_ref[...].astype(jnp.float32)
    o_ref[...] = acc.astype(o_ref.dtype)


def attn_kernel(qkv_ref, o_ref, *, n_heads, d_k, scale):
    # qkv: (S, 3D) for one batch, D-major layout: [Q | K | V], head h at
    # columns h*d_k:(h+1)*d_k inside each D block (matches view(bs,-1,H,dk)).
    D = n_heads * d_k
    qkv = qkv_ref[...].astype(jnp.float32)
    q = qkv[:, 0:D] * scale            # pre-scale q: S*D muls instead of S*S per head
    k = qkv[:, D:2 * D]
    v = qkv[:, 2 * D:3 * D]
    outs = []
    for h in range(n_heads):           # static unroll over heads
        sl = slice(h * d_k, (h + 1) * d_k)
        qh, kh, vh = q[:, sl], k[:, sl], v[:, sl]
        # q @ k^T without an explicit transpose (contract on last dims)
        s = lax.dot_general(qh, kh, (((1,), (1,)), ((), ())),
                            preferred_element_type=jnp.float32)     # (S, S)
        s = s - jnp.max(s, axis=-1, keepdims=True)
        p = jnp.exp(s)
        p = p * pl.reciprocal(jnp.sum(p, axis=-1, keepdims=True), approx=True)
        outs.append(jnp.dot(p, vh, preferred_element_type=jnp.float32))
    # single lane-dense (S, D) store
    o_ref[...] = jnp.concatenate(outs, axis=-1).astype(o_ref.dtype)


# ----------------------------------------------------------------------------
# pallas_call wrappers
# ----------------------------------------------------------------------------
def pallas_posenc(src, pe, scale):
    B, S, D = src.shape
    return pl.pallas_call(
        functools.partial(posenc_kernel, scale=scale),
        out_shape=jax.ShapeDtypeStruct((B, S, D), src.dtype),
        grid=(B,),
        in_specs=[pl.BlockSpec((None, S, D), lambda b: (b, 0, 0)),
                  pl.BlockSpec((S, D), lambda b: (0, 0))],
        out_specs=pl.BlockSpec((None, S, D), lambda b: (b, 0, 0)),
        compiler_params=pltpu.CompilerParams(dimension_semantics=("parallel",)),
    )(src, pe)


def pallas_layernorm(x, gamma, beta):
    M, D = x.shape
    tm = _row_tile(M)
    return pl.pallas_call(
        functools.partial(layernorm_kernel, eps=_EPS),
        out_shape=jax.ShapeDtypeStruct((M, D), x.dtype),
        grid=(M // tm,),
        in_specs=[pl.BlockSpec((tm, D), lambda i: (i, 0)),
                  pl.BlockSpec((1, D), lambda i: (0, 0)),
                  pl.BlockSpec((1, D), lambda i: (0, 0))],
        out_specs=pl.BlockSpec((tm, D), lambda i: (i, 0)),
        compiler_params=pltpu.CompilerParams(dimension_semantics=("parallel",)),
    )(x, gamma, beta)


def pallas_ln_matmul(x, gamma, beta, w, bias, activation=None):
    """LayerNorm(x) @ w + bias [+ relu].  x:(M,K) w:(K,N) bias:(1,N) -> (M,N)."""
    M, K = x.shape
    N = w.shape[1]
    tm, tn = _row_tile(M), _col_tile(N)
    kernel = functools.partial(ln_matmul_kernel, eps=_EPS, activation=activation)
    return pl.pallas_call(
        kernel,
        out_shape=jax.ShapeDtypeStruct((M, N), x.dtype),
        grid=(M // tm, N // tn),
        in_specs=[pl.BlockSpec((tm, K), lambda i, j: (i, 0)),
                  pl.BlockSpec((1, K), lambda i, j: (0, 0)),
                  pl.BlockSpec((1, K), lambda i, j: (0, 0)),
                  pl.BlockSpec((K, tn), lambda i, j: (0, j)),
                  pl.BlockSpec((1, tn), lambda i, j: (0, j))],
        out_specs=pl.BlockSpec((tm, tn), lambda i, j: (i, j)),
        compiler_params=pltpu.CompilerParams(
            dimension_semantics=("parallel", "parallel")),
        cost_estimate=pl.CostEstimate(
            flops=2 * M * N * K, transcendentals=0,
            bytes_accessed=4 * (M * K + K * N + M * N)),
    )(x, gamma, beta, w, bias)


def pallas_matmul_residual(x, w, bias, residual):
    """x @ w + bias + residual.  x:(M,K) w:(K,N) bias:(1,N) res:(M,N) -> (M,N)."""
    M, K = x.shape
    N = w.shape[1]
    tm, tn = _row_tile(M), _col_tile(N)
    return pl.pallas_call(
        matmul_residual_kernel,
        out_shape=jax.ShapeDtypeStruct((M, N), x.dtype),
        grid=(M // tm, N // tn),
        in_specs=[pl.BlockSpec((tm, K), lambda i, j: (i, 0)),
                  pl.BlockSpec((K, tn), lambda i, j: (0, j)),
                  pl.BlockSpec((1, tn), lambda i, j: (0, j)),
                  pl.BlockSpec((tm, tn), lambda i, j: (i, j))],
        out_specs=pl.BlockSpec((tm, tn), lambda i, j: (i, j)),
        compiler_params=pltpu.CompilerParams(
            dimension_semantics=("parallel", "parallel")),
        cost_estimate=pl.CostEstimate(
            flops=2 * M * N * K, transcendentals=0,
            bytes_accessed=4 * (M * K + K * N + 2 * M * N)),
    )(x, w, bias, residual)


def pallas_attention(qkv, n_heads):
    """qkv: (B, S, 3D) D-major -> (B, S, D).  mask=None, dropout=0."""
    B, S, D3 = qkv.shape
    D = D3 // 3
    d_k = D // n_heads
    scale = 1.0 / math.sqrt(d_k)
    kernel = functools.partial(attn_kernel, n_heads=n_heads, d_k=d_k, scale=scale)
    return pl.pallas_call(
        kernel,
        out_shape=jax.ShapeDtypeStruct((B, S, D), qkv.dtype),
        grid=(B,),
        in_specs=[pl.BlockSpec((None, S, D3), lambda b: (b, 0, 0))],
        out_specs=pl.BlockSpec((None, S, D), lambda b: (b, 0, 0)),
        compiler_params=pltpu.CompilerParams(dimension_semantics=("parallel",)),
        cost_estimate=pl.CostEstimate(
            flops=4 * B * n_heads * S * S * d_k,
            transcendentals=B * n_heads * S * S,
            bytes_accessed=4 * B * S * (D3 + D)),
    )(qkv)


# ----------------------------------------------------------------------------
# Forward pass (glue is reshape-only; no transposes between kernels)
# ----------------------------------------------------------------------------
def encoder_layer_forward(lp, x, n_heads):
    B, S, D = x.shape
    M = B * S
    x2d = x.reshape(M, D)
    # LN1 + fused QKV projection (activation read once, one lane-dense output)
    qkv = pallas_ln_matmul(x2d, lp["ln1_g"], lp["ln1_b"], lp["w_qkv"], lp["b_qkv"])
    # multi-head attention in D-major layout
    attn = pallas_attention(qkv.reshape(B, S, 3 * D), n_heads)
    # output projection + residual
    x1 = pallas_matmul_residual(attn.reshape(M, D), lp["w_o"], lp["b_o"], x2d)
    # LN2 + FF linear1 + ReLU
    h = pallas_ln_matmul(x1, lp["ln2_g"], lp["ln2_b"], lp["w_ff1"], lp["b_ff1"],
                         activation="relu")
    # FF linear2 + residual
    x2 = pallas_matmul_residual(h, lp["w_ff2"], lp["b_ff2"], x1)
    return x2.reshape(B, S, D)


def tf_encoder_forward(params, src, n_heads):
    B, S, D = src.shape
    x = pallas_posenc(src, params["pe"][:S], math.sqrt(D))
    for lp in params["layers"]:
        x = encoder_layer_forward(lp, x, n_heads)
    out = pallas_layernorm(x.reshape(B * S, D), params["ln_g"], params["ln_b"])
    return out.reshape(B, S, D)


# ----------------------------------------------------------------------------
# Parameters (PyTorch layout) + one-time prep (transpose / stack for kernels)
# ----------------------------------------------------------------------------
def make_positional_encoding(max_len, d_model):
    position = jnp.arange(max_len, dtype=jnp.float32)[:, None]
    div_term = jnp.exp(jnp.arange(0, d_model, 2, dtype=jnp.float32)
                       * (-math.log(10000.0) / d_model))
    pe = jnp.zeros((max_len, d_model), jnp.float32)
    pe = pe.at[:, 0::2].set(jnp.sin(position * div_term))
    pe = pe.at[:, 1::2].set(jnp.cos(position * div_term))
    return pe


def init_raw_params(key, d_model, n_layers, d_ff, max_seq_len):
    def linear(k, dout, din):
        k1, k2 = jax.random.split(k)
        lim = 1.0 / math.sqrt(din)  # nn.Linear default init range
        return (jax.random.uniform(k1, (dout, din), jnp.float32, -lim, lim),
                jax.random.uniform(k2, (dout,), jnp.float32, -lim, lim))

    layers = []
    for lk in jax.random.split(key, n_layers):
        ks = jax.random.split(lk, 6)
        wq, bq = linear(ks[0], d_model, d_model)
        wk, bk = linear(ks[1], d_model, d_model)
        wv, bv = linear(ks[2], d_model, d_model)
        wo, bo = linear(ks[3], d_model, d_model)
        w1, b1 = linear(ks[4], d_ff, d_model)
        w2, b2 = linear(ks[5], d_model, d_ff)
        layers.append(dict(
            wq=wq, bq=bq, wk=wk, bk=bk, wv=wv, bv=bv, wo=wo, bo=bo,
            w1=w1, b1=b1, w2=w2, b2=b2,
            ln1_g=jnp.ones((d_model,), jnp.float32), ln1_b=jnp.zeros((d_model,), jnp.float32),
            ln2_g=jnp.ones((d_model,), jnp.float32), ln2_b=jnp.zeros((d_model,), jnp.float32)))
    return dict(layers=layers,
                pe=make_positional_encoding(max_seq_len, d_model),
                ln_g=jnp.ones((d_model,), jnp.float32),
                ln_b=jnp.zeros((d_model,), jnp.float32))


def prepare_params(raw):
    """One-time host-side prep: transpose weights to (Din, Dout), stack QKV."""
    layers = []
    for L in raw["layers"]:
        layers.append(dict(
            ln1_g=L["ln1_g"].reshape(1, -1), ln1_b=L["ln1_b"].reshape(1, -1),
            w_qkv=jnp.concatenate([L["wq"].T, L["wk"].T, L["wv"].T], axis=1),
            b_qkv=jnp.concatenate([L["bq"], L["bk"], L["bv"]]).reshape(1, -1),
            w_o=L["wo"].T, b_o=L["bo"].reshape(1, -1),
            ln2_g=L["ln2_g"].reshape(1, -1), ln2_b=L["ln2_b"].reshape(1, -1),
            w_ff1=L["w1"].T, b_ff1=L["b1"].reshape(1, -1),
            w_ff2=L["w2"].T, b_ff2=L["b2"].reshape(1, -1)))
    return dict(layers=layers, pe=raw["pe"],
                ln_g=raw["ln_g"].reshape(1, -1), ln_b=raw["ln_b"].reshape(1, -1))


# ----------------------------------------------------------------------------
# Pure-JAX reference (PyTorch semantics)
# ----------------------------------------------------------------------------
def reference(raw, src, n_heads):
    B, S, D = src.shape
    d_k = D // n_heads

    def ln(x, g, b):
        mu = jnp.mean(x, axis=-1, keepdims=True)
        var = jnp.mean((x - mu) ** 2, axis=-1, keepdims=True)
        return (x - mu) / jnp.sqrt(var + _EPS) * g + b

    x = src * math.sqrt(D) + raw["pe"][None, :S]
    for L in raw["layers"]:
        x2 = ln(x, L["ln1_g"], L["ln1_b"])
        def proj(w, b):
            y = x2 @ w.T + b
            return jnp.transpose(y.reshape(B, S, n_heads, d_k), (0, 2, 1, 3))
        q, k, v = proj(L["wq"], L["bq"]), proj(L["wk"], L["bk"]), proj(L["wv"], L["bv"])
        s = jnp.einsum("bhqd,bhkd->bhqk", q, k) / math.sqrt(d_k)
        p = jax.nn.softmax(s, axis=-1)
        o = jnp.einsum("bhqk,bhkd->bhqd", p, v)
        concat = jnp.transpose(o, (0, 2, 1, 3)).reshape(B, S, D)
        x = x + (concat @ L["wo"].T + L["bo"])
        x2 = ln(x, L["ln2_g"], L["ln2_b"])
        ff = jnp.maximum(x2 @ L["w1"].T + L["b1"], 0.0) @ L["w2"].T + L["b2"]
        x = x + ff
    return ln(x, raw["ln_g"], raw["ln_b"])


if __name__ == "__main__":
    B, S, D, H, DFF, NL, MAXLEN = 2, 8, 32, 4, 64, 2, 16

    key = jax.random.PRNGKey(0)
    kp, kx = jax.random.split(key)
    raw = init_raw_params(kp, D, NL, DFF, MAXLEN)
    params = prepare_params(raw)
    src = jax.random.normal(kx, (B, S, D), jnp.float32)

    fwd = jax.jit(tf_encoder_forward, static_argnames=("n_heads",))
    out = fwd(params, src, n_heads=H)
    out = jax.block_until_ready(out)

    ref = reference(raw, src, H)
    assert out.shape == (B, S, D)
    # tolerance slightly relaxed vs 1e-4: softmax uses approx (EUP) reciprocal
    err = float(jnp.max(jnp.abs(out - ref)))
    assert jnp.allclose(out, ref, atol=2e-3, rtol=2e-3), f"mismatch vs reference (max abs err {err})"

    print("KERNEL_OK")
</pallas_src>

<mosaic_0001>
module attributes {stable_mosaic.version = 11 : i64} {
  func.func @posenc_kernel(%arg0: i32, %arg1: memref<1x8x32xf32, #tpu.memory_space<vmem>>, %arg2: memref<8x32xf32, #tpu.memory_space<vmem>>, %arg3: memref<1x8x32xf32, #tpu.memory_space<vmem>>) attributes {dimension_semantics = [#tpu.dimension_semantics<parallel>], iteration_bounds = array<i64: 2>, scalar_prefetch = 0 : i64, scratch_operands = 0 : i64, tpu.core_type = #tpu.core_type<tc>, window_params = [{transform_indices = @transform_0, window_bounds = array<i64: 1, 8, 32>}, {pipeline_mode = #tpu.pipeline_mode<synchronous>, transform_indices = @transform_1, window_bounds = array<i64: 8, 32>}, {transform_indices = @transform_2, window_bounds = array<i64: 1, 8, 32>}]} {
    %c0 = arith.constant 0 : index
    %c0_0 = arith.constant 0 : index
    %c0_1 = arith.constant 0 : index
    %0 = vector.load %arg1[%c0, %c0_0, %c0_1] : memref<1x8x32xf32, #tpu.memory_space<vmem>>, vector<1x8x32xf32>
    %1 = vector.shape_cast %0 : vector<1x8x32xf32> to vector<8x32xf32>
    %cst = arith.constant 5.65685415 : f32
    %2 = vector.broadcast %cst : f32 to vector<8x32xf32>
    %3 = arith.mulf %1, %2 : vector<8x32xf32>
    %c0_2 = arith.constant 0 : index
    %c0_3 = arith.constant 0 : index
    %4 = vector.load %arg2[%c0_2, %c0_3] : memref<8x32xf32, #tpu.memory_space<vmem>>, vector<8x32xf32>
    %5 = arith.addf %3, %4 : vector<8x32xf32>
    %c0_4 = arith.constant 0 : index
    %c0_5 = arith.constant 0 : index
    %c0_6 = arith.constant 0 : index
    %6 = vector.load %arg3[%c0_4, %c0_5, %c0_6] : memref<1x8x32xf32, #tpu.memory_space<vmem>>, vector<1x8x32xf32>
    %7 = vector.shape_cast %6 : vector<1x8x32xf32> to vector<8x32xf32>
    %8 = vector.shape_cast %5 : vector<8x32xf32> to vector<1x8x32xf32>
    tpu.vector_store %arg3[%c0_4, %c0_5, %c0_6], %8 {strides = array<i32>} : memref<1x8x32xf32, #tpu.memory_space<vmem>>, vector<1x8x32xf32>,
    return
  }
  func.func @transform_0(%arg0: i32) -> (i32, i32, i32) {
    %c0_i32 = arith.constant 0 : i32
    %c0_i32_0 = arith.constant 0 : i32
    %c0_i32_1 = arith.constant 0 : i32
    return %arg0, %c0_i32, %c0_i32_0 : i32, i32, i32
  }
  func.func @transform_1(%arg0: i32) -> (i32, i32) {
    %c0_i32 = arith.constant 0 : i32
    %c0_i32_0 = arith.constant 0 : i32
    %c0_i32_1 = arith.constant 0 : i32
    return %c0_i32, %c0_i32_0 : i32, i32
  }
  func.func @transform_2(%arg0: i32) -> (i32, i32, i32) {
    %c0_i32 = arith.constant 0 : i32
    %c0_i32_0 = arith.constant 0 : i32
    %c0_i32_1 = arith.constant 0 : i32
    return %arg0, %c0_i32, %c0_i32_0 : i32, i32, i32
  }
}

module attributes {stable_mosaic.version = 11 : i64} {
  func.func @matmul_residual_kernel(%arg0: i32, %arg1: i32, %arg2: memref<8x32xf32, #tpu.memory_space<vmem>>, %arg3: memref<32x32xf32, #tpu.memory_space<vmem>>, %arg4: memref<1x32xf32, #tpu.memory_space<vmem>>, %arg5: memref<8x32xf32, #tpu.memory_space<vmem>>, %arg6: memref<8x32xf32, #tpu.memory_space<vmem>>) attributes {dimension_semantics = [#tpu.dimension_semantics<parallel>, #tpu.dimension_semantics<parallel>], iteration_bounds = array<i64: 2, 1>, scalar_prefetch = 0 : i64, scratch_operands = 0 : i64, tpu.core_type = #tpu.core_type<tc>, window_params = [{transform_indices = @transform_0, window_bounds = array<i64: 8, 32>}, {transform_indices = @transform_1, window_bounds = array<i64: 32, 32>}, {transform_indices = @transform_2, window_bounds = array<i64: 1, 32>}, {transform_indices = @transform_3, window_bounds = array<i64: 8, 32>}, {transform_indices = @transform_4, window_bounds = array<i64: 8, 32>}]} {
    %c0 = arith.constant 0 : index
    %c0_0 = arith.constant 0 : index
    %0 = vector.load %arg2[%c0, %c0_0] : memref<8x32xf32, #tpu.memory_space<vmem>>, vector<8x32xf32>
    %c0_1 = arith.constant 0 : index
    %c0_2 = arith.constant 0 : index
    %1 = vector.load %arg3[%c0_1, %c0_2] : memref<32x32xf32, #tpu.memory_space<vmem>>, vector<32x32xf32>
    %cst = arith.constant dense<0.000000e+00> : vector<8x32xf32>
    %2 = tpu.matmul %0, %1, %cst {dimension_numbers = #tpu.dot_dimension_numbers<[1], [0], [0], [1], [0, 0, 1, 1], [], []>} : vector<8x32xf32>, vector<32x32xf32>, vector<8x32xf32> -> vector<8x32xf32>
    %c0_3 = arith.constant 0 : index
    %c0_4 = arith.constant 0 : index
    %3 = vector.load %arg4[%c0_3, %c0_4] : memref<1x32xf32, #tpu.memory_space<vmem>>, vector<1x32xf32>
    %4 = vector.broadcast %3 : vector<1x32xf32> to vector<8x32xf32>
    %5 = arith.addf %2, %4 : vector<8x32xf32>
    %c0_5 = arith.constant 0 : index
    %c0_6 = arith.constant 0 : index
    %6 = vector.load %arg5[%c0_5, %c0_6] : memref<8x32xf32, #tpu.memory_space<vmem>>, vector<8x32xf32>
    %7 = arith.addf %5, %6 : vector<8x32xf32>
    %c0_7 = arith.constant 0 : index
    %c0_8 = arith.constant 0 : index
    %8 = vector.load %arg6[%c0_7, %c0_8] : memref<8x32xf32, #tpu.memory_space<vmem>>, vector<8x32xf32>
    tpu.vector_store %arg6[%c0_7, %c0_8], %7 {strides = array<i32>} : memref<8x32xf32, #tpu.memory_space<vmem>>, vector<8x32xf32>,
    return
  }
  func.func @transform_0(%arg0: i32, %arg1: i32) -> (i32, i32) {
    %c0_i32 = arith.constant 0 : i32
    %c0_i32_0 = arith.constant 0 : i32
    return %arg0, %c0_i32 : i32, i32
  }
  func.func @transform_1(%arg0: i32, %arg1: i32) -> (i32, i32) {
    %c0_i32 = arith.constant 0 : i32
    %c0_i32_0 = arith.constant 0 : i32
    return %c0_i32, %arg1 : i32, i32
  }
  func.func @transform_2(%arg0: i32, %arg1: i32) -> (i32, i32) {
    %c0_i32 = arith.constant 0 : i32
    %c0_i32_0 = arith.constant 0 : i32
    return %c0_i32, %arg1 : i32, i32
  }
  func.func @transform_3(%arg0: i32, %arg1: i32) -> (i32, i32) {
    %c0_i32 = arith.constant 0 : i32
    return %arg0, %arg1 : i32, i32
  }
  func.func @transform_4(%arg0: i32, %arg1: i32) -> (i32, i32) {
    %c0_i32 = arith.constant 0 : i32
    return %arg0, %arg1 : i32, i32
  }
}

module attributes {stable_mosaic.version = 11 : i64} {
  func.func @attn_kernel(%arg0: i32, %arg1: memref<1x8x96xf32, #tpu.memory_space<vmem>>, %arg2: memref<1x8x32xf32, #tpu.memory_space<vmem>>) attributes {dimension_semantics = [#tpu.dimension_semantics<parallel>], iteration_bounds = array<i64: 2>, scalar_prefetch = 0 : i64, scratch_operands = 0 : i64, tpu.core_type = #tpu.core_type<tc>, window_params = [{transform_indices = @transform_0, window_bounds = array<i64: 1, 8, 96>}, {transform_indices = @transform_1, window_bounds = array<i64: 1, 8, 32>}]} {
    %c0 = arith.constant 0 : index
    %c0_0 = arith.constant 0 : index
    %c0_1 = arith.constant 0 : index
    %0 = vector.load %arg1[%c0, %c0_0, %c0_1] : memref<1x8x96xf32, #tpu.memory_space<vmem>>, vector<1x8x96xf32>
    %1 = vector.shape_cast %0 : vector<1x8x96xf32> to vector<8x96xf32>
    %2 = vector.extract_strided_slice %1 {offsets = [0, 0], sizes = [8, 32], strides = [1, 1]} : vector<8x96xf32> to vector<8x32xf32>
    %cst = arith.constant 0.353553385 : f32
    %3 = vector.broadcast %cst : f32 to vector<8x32xf32>
    %4 = arith.mulf %2, %3 : vector<8x32xf32>
    %5 = vector.extract_strided_slice %1 {offsets = [0, 32], sizes = [8, 32], strides = [1, 1]} : vector<8x96xf32> to vector<8x32xf32>
    %6 = vector.extract_strided_slice %1 {offsets = [0, 64], sizes = [8, 32], strides = [1, 1]} : vector<8x96xf32> to vector<8x32xf32>
    %7 = vector.extract_strided_slice %4 {offsets = [0, 0], sizes = [8, 8], strides = [1, 1]} : vector<8x32xf32> to vector<8x8xf32>
    %8 = vector.extract_strided_slice %5 {offsets = [0, 0], sizes = [8, 8], strides = [1, 1]} : vector<8x32xf32> to vector<8x8xf32>
    %9 = vector.extract_strided_slice %6 {offsets = [0, 0], sizes = [8, 8], strides = [1, 1]} : vector<8x32xf32> to vector<8x8xf32>
    %cst_2 = arith.constant dense<0.000000e+00> : vector<8x8xf32>
    %10 = tpu.matmul %7, %8, %cst_2 {dimension_numbers = #tpu.dot_dimension_numbers<[1], [1], [0], [0], [0, 0, 1, 0], [], []>} : vector<8x8xf32>, vector<8x8xf32>, vector<8x8xf32> -> vector<8x8xf32>
    %cst_3 = arith.constant dense<0xFF800000> : vector<8xf32>
    %11 = vector.multi_reduction <maximumf>, %10, %cst_3 [1] : vector<8x8xf32> to vector<8xf32>
    %12 = vector.shape_cast %11 : vector<8xf32> to vector<8x1xf32>
    %13 = vector.broadcast %12 : vector<8x1xf32> to vector<8x8xf32>
    %14 = arith.subf %10, %13 : vector<8x8xf32>
    %15 = math.exp %14 : vector<8x8xf32>
    %cst_4 = arith.constant dense<0.000000e+00> : vector<8xf32>
    %16 = vector.multi_reduction <add>, %15, %cst_4 [1] : vector<8x8xf32> to vector<8xf32>
    %17 = vector.shape_cast %16 : vector<8xf32> to vector<8x1xf32>
    %18 = tpu.reciprocal %17 {approx = true} : vector<8x1xf32> -> vector<8x1xf32>
    %19 = vector.broadcast %18 : vector<8x1xf32> to vector<8x8xf32>
    %20 = arith.mulf %15, %19 : vector<8x8xf32>
    %cst_5 = arith.constant dense<0.000000e+00> : vector<8x8xf32>
    %21 = tpu.matmul %20, %9, %cst_5 {dimension_numbers = #tpu.dot_dimension_numbers<[1], [0], [0], [1], [0, 0, 1, 1], [], []>} : vector<8x8xf32>, vector<8x8xf32>, vector<8x8xf32> -> vector<8x8xf32>
    %22 = vector.extract_strided_slice %4 {offsets = [0, 8], sizes = [8, 8], strides = [1, 1]} : vector<8x32xf32> to vector<8x8xf32>
    %23 = vector.extract_strided_slice %5 {offsets = [0, 8], sizes = [8, 8], strides = [1, 1]} : vector<8x32xf32> to vector<8x8xf32>
    %24 = vector.extract_strided_slice %6 {offsets = [0, 8], sizes = [8, 8], strides = [1, 1]} : vector<8x32xf32> to vector<8x8xf32>
    %cst_6 = arith.constant dense<0.000000e+00> : vector<8x8xf32>
    %25 = tpu.matmul %22, %23, %cst_6 {dimension_numbers = #tpu.dot_dimension_numbers<[1], [1], [0], [0], [0, 0, 1, 0], [], []>} : vector<8x8xf32>, vector<8x8xf32>, vector<8x8xf32> -> vector<8x8xf32>
    %cst_7 = arith.constant dense<0xFF800000> : vector<8xf32>
    %26 = vector.multi_reduction <maximumf>, %25, %cst_7 [1] : vector<8x8xf32> to vector<8xf32>
    %27 = vector.shape_cast %26 : vector<8xf32> to vector<8x1xf32>
    %28 = vector.broadcast %27 : vector<8x1xf32> to vector<8x8xf32>
    %29 = arith.subf %25, %28 : vector<8x8xf32>
    %30 = math.exp %29 : vector<8x8xf32>
    %cst_8 = arith.constant dense<0.000000e+00> : vector<8xf32>
    %31 = vector.multi_reduction <add>, %30, %cst_8 [1] : vector<8x8xf32> to vector<8xf32>
    %32 = vector.shape_cast %31 : vector<8xf32> to vector<8x1xf32>
    %33 = tpu.reciprocal %32 {approx = true} : vector<8x1xf32> -> vector<8x1xf32>
    %34 = vector.broadcast %33 : vector<8x1xf32> to vector<8x8xf32>
    %35 = arith.mulf %30, %34 : vector<8x8xf32>
    %cst_9 = arith.constant dense<0.000000e+00> : vector<8x8xf32>
    %36 = tpu.matmul %35, %24, %cst_9 {dimension_numbers = #tpu.dot_dimension_numbers<[1], [0], [0], [1], [0, 0, 1, 1], [], []>} : vector<8x8xf32>, vector<8x8xf32>, vector<8x8xf32> -> vector<8x8xf32>
    %37 = vector.extract_strided_slice %4 {offsets = [0, 16], sizes = [8, 8], strides = [1, 1]} : vector<8x32xf32> to vector<8x8xf32>
    %38 = vector.extract_strided_slice %5 {offsets = [0, 16], sizes = [8, 8], strides = [1, 1]} : vector<8x32xf32> to vector<8x8xf32>
    %39 = vector.extract_strided_slice %6 {offsets = [0, 16], sizes = [8, 8], strides = [1, 1]} : vector<8x32xf32> to vector<8x8xf32>
    %cst_10 = arith.constant dense<0.000000e+00> : vector<8x8xf32>
    %40 = tpu.matmul %37, %38, %cst_10 {dimension_numbers = #tpu.dot_dimension_numbers<[1], [1], [0], [0], [0, 0, 1, 0], [], []>} : vector<8x8xf32>, vector<8x8xf32>, vector<8x8xf32> -> vector<8x8xf32>
    %cst_11 = arith.constant dense<0xFF800000> : vector<8xf32>
    %41 = vector.multi_reduction <maximumf>, %40, %cst_11 [1] : vector<8x8xf32> to vector<8xf32>
    %42 = vector.shape_cast %41 : vector<8xf32> to vector<8x1xf32>
    %43 = vector.broadcast %42 : vector<8x1xf32> to vector<8x8xf32>
    %44 = arith.subf %40, %43 : vector<8x8xf32>
    %45 = math.exp %44 : vector<8x8xf32>
    %cst_12 = arith.constant dense<0.000000e+00> : vector<8xf32>
    %46 = vector.multi_reduction <add>, %45, %cst_12 [1] : vector<8x8xf32> to vector<8xf32>
    %47 = vector.shape_cast %46 : vector<8xf32> to vector<8x1xf32>
    %48 = tpu.reciprocal %47 {approx = true} : vector<8x1xf32> -> vector<8x1xf32>
    %49 = vector.broadcast %48 : vector<8x1xf32> to vector<8x8xf32>
    %50 = arith.mulf %45, %49 : vector<8x8xf32>
    %cst_13 = arith.constant dense<0.000000e+00> : vector<8x8xf32>
    %51 = tpu.matmul %50, %39, %cst_13 {dimension_numbers = #tpu.dot_dimension_numbers<[1], [0], [0], [1], [0, 0, 1, 1], [], []>} : vector<8x8xf32>, vector<8x8xf32>, vector<8x8xf32> -> vector<8x8xf32>
    %52 = vector.extract_strided_slice %4 {offsets = [0, 24], sizes = [8, 8], strides = [1, 1]} : vector<8x32xf32> to vector<8x8xf32>
    %53 = vector.extract_strided_slice %5 {offsets = [0, 24], sizes = [8, 8], strides = [1, 1]} : vector<8x32xf32> to vector<8x8xf32>
    %54 = vector.extract_strided_slice %6 {offsets = [0, 24], sizes = [8, 8], strides = [1, 1]} : vector<8x32xf32> to vector<8x8xf32>
    %cst_14 = arith.constant dense<0.000000e+00> : vector<8x8xf32>
    %55 = tpu.matmul %52, %53, %cst_14 {dimension_numbers = #tpu.dot_dimension_numbers<[1], [1], [0], [0], [0, 0, 1, 0], [], []>} : vector<8x8xf32>, vector<8x8xf32>, vector<8x8xf32> -> vector<8x8xf32>
    %cst_15 = arith.constant dense<0xFF800000> : vector<8xf32>
    %56 = vector.multi_reduction <maximumf>, %55, %cst_15 [1] : vector<8x8xf32> to vector<8xf32>
    %57 = vector.shape_cast %56 : vector<8xf32> to vector<8x1xf32>
    %58 = vector.broadcast %57 : vector<8x1xf32> to vector<8x8xf32>
    %59 = arith.subf %55, %58 : vector<8x8xf32>
    %60 = math.exp %59 : vector<8x8xf32>
    %cst_16 = arith.constant dense<0.000000e+00> : vector<8xf32>
    %61 = vector.multi_reduction <add>, %60, %cst_16 [1] : vector<8x8xf32> to vector<8xf32>
    %62 = vector.shape_cast %61 : vector<8xf32> to vector<8x1xf32>
    %63 = tpu.reciprocal %62 {approx = true} : vector<8x1xf32> -> vector<8x1xf32>
    %64 = vector.broadcast %63 : vector<8x1xf32> to vector<8x8xf32>
    %65 = arith.mulf %60, %64 : vector<8x8xf32>
    %cst_17 = arith.constant dense<0.000000e+00> : vector<8x8xf32>
    %66 = tpu.matmul %65, %54, %cst_17 {dimension_numbers = #tpu.dot_dimension_numbers<[1], [0], [0], [1], [0, 0, 1, 1], [], []>} : vector<8x8xf32>, vector<8x8xf32>, vector<8x8xf32> -> vector<8x8xf32>
    %67 = tpu.concatenate %21, %36, %51, %66 in 1 : vector<8x8xf32>, vector<8x8xf32>, vector<8x8xf32>, vector<8x8xf32> -> vector<8x32xf32>
    %c0_18 = arith.constant 0 : index
    %c0_19 = arith.constant 0 : index
    %c0_20 = arith.constant 0 : index
    %68 = vector.load %arg2[%c0_18, %c0_19, %c0_20] : memref<1x8x32xf32, #tpu.memory_space<vmem>>, vector<1x8x32xf32>
    %69 = vector.shape_cast %68 : vector<1x8x32xf32> to vector<8x32xf32>
    %70 = vector.shape_cast %67 : vector<8x32xf32> to vector<1x8x32xf32>
    tpu.vector_store %arg2[%c0_18, %c0_19, %c0_20], %70 {strides = array<i32>} : memref<1x8x32xf32, #tpu.memory_space<vmem>>, vector<1x8x32xf32>,
    return
  }
  func.func @transform_0(%arg0: i32) -> (i32, i32, i32) {
    %c0_i32 = arith.constant 0 : i32
    %c0_i32_0 = arith.constant 0 : i32
    %c0_i32_1 = arith.constant 0 : i32
    return %arg0, %c0_i32, %c0_i32_0 : i32, i32, i32
  }
  func.func @transform_1(%arg0: i32) -> (i32, i32, i32) {
    %c0_i32 = arith.constant 0 : i32
    %c0_i32_0 = arith.constant 0 : i32
    %c0_i32_1 = arith.constant 0 : i32
    return %arg0, %c0_i32, %c0_i32_0 : i32, i32, i32
  }
}

module attributes {stable_mosaic.version = 11 : i64} {
  func.func @ln_matmul_kernel(%arg0: i32, %arg1: i32, %arg2: memref<8x32xf32, #tpu.memory_space<vmem>>, %arg3: memref<1x32xf32, #tpu.memory_space<vmem>>, %arg4: memref<1x32xf32, #tpu.memory_space<vmem>>, %arg5: memref<32x96xf32, #tpu.memory_space<vmem>>, %arg6: memref<1x96xf32, #tpu.memory_space<vmem>>, %arg7: memref<8x96xf32, #tpu.memory_space<vmem>>) attributes {dimension_semantics = [#tpu.dimension_semantics<parallel>, #tpu.dimension_semantics<parallel>], iteration_bounds = array<i64: 2, 1>, scalar_prefetch = 0 : i64, scratch_operands = 0 : i64, tpu.core_type = #tpu.core_type<tc>, window_params = [{transform_indices = @transform_0, window_bounds = array<i64: 8, 32>}, {pipeline_mode = #tpu.pipeline_mode<synchronous>, transform_indices = @transform_1, window_bounds = array<i64: 1, 32>}, {pipeline_mode = #tpu.pipeline_mode<synchronous>, transform_indices = @transform_2, window_bounds = array<i64: 1, 32>}, {transform_indices = @transform_3, window_bounds = array<i64: 32, 96>}, {transform_indices = @transform_4, window_bounds = array<i64: 1, 96>}, {transform_indices = @transform_5, window_bounds = array<i64: 8, 96>}]} {
    %c0 = arith.constant 0 : index
    %c0_0 = arith.constant 0 : index
    %0 = vector.load %arg2[%c0, %c0_0] : memref<8x32xf32, #tpu.memory_space<vmem>>, vector<8x32xf32>
    %cst = arith.constant dense<0.000000e+00> : vector<8xf32>
    %1 = vector.multi_reduction <add>, %0, %cst [1] : vector<8x32xf32> to vector<8xf32>
    %2 = vector.shape_cast %1 : vector<8xf32> to vector<8x1xf32>
    %cst_1 = arith.constant 3.200000e+01 : f32
    %3 = vector.broadcast %cst_1 : f32 to vector<8x1xf32>
    %4 = arith.divf %2, %3 : vector<8x1xf32>
    %5 = vector.broadcast %4 : vector<8x1xf32> to vector<8x32xf32>
    %6 = arith.subf %0, %5 : vector<8x32xf32>
    %7 = arith.mulf %6, %6 : vector<8x32xf32>
    %cst_2 = arith.constant dense<0.000000e+00> : vector<8xf32>
    %8 = vector.multi_reduction <add>, %7, %cst_2 [1] : vector<8x32xf32> to vector<8xf32>
    %9 = vector.shape_cast %8 : vector<8xf32> to vector<8x1xf32>
    %cst_3 = arith.constant 3.200000e+01 : f32
    %10 = vector.broadcast %cst_3 : f32 to vector<8x1xf32>
    %11 = arith.divf %9, %10 : vector<8x1xf32>
    %cst_4 = arith.constant 9.99999974E-6 : f32
    %12 = vector.broadcast %cst_4 : f32 to vector<8x1xf32>
    %13 = arith.addf %11, %12 : vector<8x1xf32>
    %14 = math.rsqrt %13 : vector<8x1xf32>
    %15 = vector.broadcast %14 : vector<8x1xf32> to vector<8x32xf32>
    %16 = arith.mulf %6, %15 : vector<8x32xf32>
    %c0_5 = arith.constant 0 : index
    %c0_6 = arith.constant 0 : index
    %17 = vector.load %arg3[%c0_5, %c0_6] : memref<1x32xf32, #tpu.memory_space<vmem>>, vector<1x32xf32>
    %18 = vector.broadcast %17 : vector<1x32xf32> to vector<8x32xf32>
    %19 = arith.mulf %16, %18 : vector<8x32xf32>
    %c0_7 = arith.constant 0 : index
    %c0_8 = arith.constant 0 : index
    %20 = vector.load %arg4[%c0_7, %c0_8] : memref<1x32xf32, #tpu.memory_space<vmem>>, vector<1x32xf32>
    %21 = vector.broadcast %20 : vector<1x32xf32> to vector<8x32xf32>
    %22 = arith.addf %19, %21 : vector<8x32xf32>
    %c0_9 = arith.constant 0 : index
    %c0_10 = arith.constant 0 : index
    %23 = vector.load %arg5[%c0_9, %c0_10] : memref<32x96xf32, #tpu.memory_space<vmem>>, vector<32x96xf32>
    %cst_11 = arith.constant dense<0.000000e+00> : vector<8x96xf32>
    %24 = tpu.matmul %22, %23, %cst_11 {dimension_numbers = #tpu.dot_dimension_numbers<[1], [0], [0], [1], [0, 0, 1, 1], [], []>} : vector<8x32xf32>, vector<32x96xf32>, vector<8x96xf32> -> vector<8x96xf32>
    %c0_12 = arith.constant 0 : index
    %c0_13 = arith.constant 0 : index
    %25 = vector.load %arg6[%c0_12, %c0_13] : memref<1x96xf32, #tpu.memory_space<vmem>>, vector<1x96xf32>
    %26 = vector.broadcast %25 : vector<1x96xf32> to vector<8x96xf32>
    %27 = arith.addf %24, %26 : vector<8x96xf32>
    %c0_14 = arith.constant 0 : index
    %c0_15 = arith.constant 0 : index
    %28 = vector.load %arg7[%c0_14, %c0_15] : memref<8x96xf32, #tpu.memory_space<vmem>>, vector<8x96xf32>
    tpu.vector_store %arg7[%c0_14, %c0_15], %27 {strides = array<i32>} : memref<8x96xf32, #tpu.memory_space<vmem>>, vector<8x96xf32>,
    return
  }
  func.func @transform_0(%arg0: i32, %arg1: i32) -> (i32, i32) {
    %c0_i32 = arith.constant 0 : i32
    %c0_i32_0 = arith.constant 0 : i32
    return %arg0, %c0_i32 : i32, i32
  }
  func.func @transform_1(%arg0: i32, %arg1: i32) -> (i32, i32) {
    %c0_i32 = arith.constant 0 : i32
    %c0_i32_0 = arith.constant 0 : i32
    %c0_i32_1 = arith.constant 0 : i32
    return %c0_i32, %c0_i32_0 : i32, i32
  }
  func.func @transform_2(%arg0: i32, %arg1: i32) -> (i32, i32) {
    %c0_i32 = arith.constant 0 : i32
    %c0_i32_0 = arith.constant 0 : i32
    %c0_i32_1 = arith.constant 0 : i32
    return %c0_i32, %c0_i32_0 : i32, i32
  }
  func.func @transform_3(%arg0: i32, %arg1: i32) -> (i32, i32) {
    %c0_i32 = arith.constant 0 : i32
    %c0_i32_0 = arith.constant 0 : i32
    return %c0_i32, %arg1 : i32, i32
  }
  func.func @transform_4(%arg0: i32, %arg1: i32) -> (i32, i32) {
    %c0_i32 = arith.constant 0 : i32
    %c0_i32_0 = arith.constant 0 : i32
    return %c0_i32, %arg1 : i32, i32
  }
  func.func @transform_5(%arg0: i32, %arg1: i32) -> (i32, i32) {
    %c0_i32 = arith.constant 0 : i32
    return %arg0, %arg1 : i32, i32
  }
}

module attributes {stable_mosaic.version = 11 : i64} {
  func.func @ln_matmul_kernel(%arg0: i32, %arg1: i32, %arg2: memref<8x32xf32, #tpu.memory_space<vmem>>, %arg3: memref<1x32xf32, #tpu.memory_space<vmem>>, %arg4: memref<1x32xf32, #tpu.memory_space<vmem>>, %arg5: memref<32x64xf32, #tpu.memory_space<vmem>>, %arg6: memref<1x64xf32, #tpu.memory_space<vmem>>, %arg7: memref<8x64xf32, #tpu.memory_space<vmem>>) attributes {dimension_semantics = [#tpu.dimension_semantics<parallel>, #tpu.dimension_semantics<parallel>], iteration_bounds = array<i64: 2, 1>, scalar_prefetch = 0 : i64, scratch_operands = 0 : i64, tpu.core_type = #tpu.core_type<tc>, window_params = [{transform_indices = @transform_0, window_bounds = array<i64: 8, 32>}, {pipeline_mode = #tpu.pipeline_mode<synchronous>, transform_indices = @transform_1, window_bounds = array<i64: 1, 32>}, {pipeline_mode = #tpu.pipeline_mode<synchronous>, transform_indices = @transform_2, window_bounds = array<i64: 1, 32>}, {transform_indices = @transform_3, window_bounds = array<i64: 32, 64>}, {transform_indices = @transform_4, window_bounds = array<i64: 1, 64>}, {transform_indices = @transform_5, window_bounds = array<i64: 8, 64>}]} {
    %c0 = arith.constant 0 : index
    %c0_0 = arith.constant 0 : index
    %0 = vector.load %arg2[%c0, %c0_0] : memref<8x32xf32, #tpu.memory_space<vmem>>, vector<8x32xf32>
    %cst = arith.constant dense<0.000000e+00> : vector<8xf32>
    %1 = vector.multi_reduction <add>, %0, %cst [1] : vector<8x32xf32> to vector<8xf32>
    %2 = vector.shape_cast %1 : vector<8xf32> to vector<8x1xf32>
    %cst_1 = arith.constant 3.200000e+01 : f32
    %3 = vector.broadcast %cst_1 : f32 to vector<8x1xf32>
    %4 = arith.divf %2, %3 : vector<8x1xf32>
    %5 = vector.broadcast %4 : vector<8x1xf32> to vector<8x32xf32>
    %6 = arith.subf %0, %5 : vector<8x32xf32>
    %7 = arith.mulf %6, %6 : vector<8x32xf32>
    %cst_2 = arith.constant dense<0.000000e+00> : vector<8xf32>
    %8 = vector.multi_reduction <add>, %7, %cst_2 [1] : vector<8x32xf32> to vector<8xf32>
    %9 = vector.shape_cast %8 : vector<8xf32> to vector<8x1xf32>
    %cst_3 = arith.constant 3.200000e+01 : f32
    %10 = vector.broadcast %cst_3 : f32 to vector<8x1xf32>
    %11 = arith.divf %9, %10 : vector<8x1xf32>
    %cst_4 = arith.constant 9.99999974E-6 : f32
    %12 = vector.broadcast %cst_4 : f32 to vector<8x1xf32>
    %13 = arith.addf %11, %12 : vector<8x1xf32>
    %14 = math.rsqrt %13 : vector<8x1xf32>
    %15 = vector.broadcast %14 : vector<8x1xf32> to vector<8x32xf32>
    %16 = arith.mulf %6, %15 : vector<8x32xf32>
    %c0_5 = arith.constant 0 : index
    %c0_6 = arith.constant 0 : index
    %17 = vector.load %arg3[%c0_5, %c0_6] : memref<1x32xf32, #tpu.memory_space<vmem>>, vector<1x32xf32>
    %18 = vector.broadcast %17 : vector<1x32xf32> to vector<8x32xf32>
    %19 = arith.mulf %16, %18 : vector<8x32xf32>
    %c0_7 = arith.constant 0 : index
    %c0_8 = arith.constant 0 : index
    %20 = vector.load %arg4[%c0_7, %c0_8] : memref<1x32xf32, #tpu.memory_space<vmem>>, vector<1x32xf32>
    %21 = vector.broadcast %20 : vector<1x32xf32> to vector<8x32xf32>
    %22 = arith.addf %19, %21 : vector<8x32xf32>
    %c0_9 = arith.constant 0 : index
    %c0_10 = arith.constant 0 : index
    %23 = vector.load %arg5[%c0_9, %c0_10] : memref<32x64xf32, #tpu.memory_space<vmem>>, vector<32x64xf32>
    %cst_11 = arith.constant dense<0.000000e+00> : vector<8x64xf32>
    %24 = tpu.matmul %22, %23, %cst_11 {dimension_numbers = #tpu.dot_dimension_numbers<[1], [0], [0], [1], [0, 0, 1, 1], [], []>} : vector<8x32xf32>, vector<32x64xf32>, vector<8x64xf32> -> vector<8x64xf32>
    %c0_12 = arith.constant 0 : index
    %c0_13 = arith.constant 0 : index
    %25 = vector.load %arg6[%c0_12, %c0_13] : memref<1x64xf32, #tpu.memory_space<vmem>>, vector<1x64xf32>
    %26 = vector.broadcast %25 : vector<1x64xf32> to vector<8x64xf32>
    %27 = arith.addf %24, %26 : vector<8x64xf32>
    %cst_14 = arith.constant 0.000000e+00 : f32
    %28 = vector.broadcast %cst_14 : f32 to vector<8x64xf32>
    %29 = arith.maximumf %27, %28 : vector<8x64xf32>
    %c0_15 = arith.constant 0 : index
    %c0_16 = arith.constant 0 : index
    %30 = vector.load %arg7[%c0_15, %c0_16] : memref<8x64xf32, #tpu.memory_space<vmem>>, vector<8x64xf32>
    tpu.vector_store %arg7[%c0_15, %c0_16], %29 {strides = array<i32>} : memref<8x64xf32, #tpu.memory_space<vmem>>, vector<8x64xf32>,
    return
  }
  func.func @transform_0(%arg0: i32, %arg1: i32) -> (i32, i32) {
    %c0_i32 = arith.constant 0 : i32
    %c0_i32_0 = arith.constant 0 : i32
    return %arg0, %c0_i32 : i32, i32
  }
  func.func @transform_1(%arg0: i32, %arg1: i32) -> (i32, i32) {
    %c0_i32 = arith.constant 0 : i32
    %c0_i32_0 = arith.constant 0 : i32
    %c0_i32_1 = arith.constant 0 : i32
    return %c0_i32, %c0_i32_0 : i32, i32
  }
  func.func @transform_2(%arg0: i32, %arg1: i32) -> (i32, i32) {
    %c0_i32 = arith.constant 0 : i32
    %c0_i32_0 = arith.constant 0 : i32
    %c0_i32_1 = arith.constant 0 : i32
    return %c0_i32, %c0_i32_0 : i32, i32
  }
  func.func @transform_3(%arg0: i32, %arg1: i32) -> (i32, i32) {
    %c0_i32 = arith.constant 0 : i32
    %c0_i32_0 = arith.constant 0 : i32
    return %c0_i32, %arg1 : i32, i32
  }
  func.func @transform_4(%arg0: i32, %arg1: i32) -> (i32, i32) {
    %c0_i32 = arith.constant 0 : i32
    %c0_i32_0 = arith.constant 0 : i32
    return %c0_i32, %arg1 : i32, i32
  }
  func.func @transform_5(%arg0: i32, %arg1: i32) -> (i32, i32) {
    %c0_i32 = arith.constant 0 : i32
    return %arg0, %arg1 : i32, i32
  }
}

module attributes {stable_mosaic.version = 11 : i64} {
  func.func @matmul_residual_kernel(%arg0: i32, %arg1: i32, %arg2: memref<8x64xf32, #tpu.memory_space<vmem>>, %arg3: memref<64x32xf32, #tpu.memory_space<vmem>>, %arg4: memref<1x32xf32, #tpu.memory_space<vmem>>, %arg5: memref<8x32xf32, #tpu.memory_space<vmem>>, %arg6: memref<8x32xf32, #tpu.memory_space<vmem>>) attributes {dimension_semantics = [#tpu.dimension_semantics<parallel>, #tpu.dimension_semantics<parallel>], iteration_bounds = array<i64: 2, 1>, scalar_prefetch = 0 : i64, scratch_operands = 0 : i64, tpu.core_type = #tpu.core_type<tc>, window_params = [{transform_indices = @transform_0, window_bounds = array<i64: 8, 64>}, {transform_indices = @transform_1, window_bounds = array<i64: 64, 32>}, {transform_indices = @transform_2, window_bounds = array<i64: 1, 32>}, {transform_indices = @transform_3, window_bounds = array<i64: 8, 32>}, {transform_indices = @transform_4, window_bounds = array<i64: 8, 32>}]} {
    %c0 = arith.constant 0 : index
    %c0_0 = arith.constant 0 : index
    %0 = vector.load %arg2[%c0, %c0_0] : memref<8x64xf32, #tpu.memory_space<vmem>>, vector<8x64xf32>
    %c0_1 = arith.constant 0 : index
    %c0_2 = arith.constant 0 : index
    %1 = vector.load %arg3[%c0_1, %c0_2] : memref<64x32xf32, #tpu.memory_space<vmem>>, vector<64x32xf32>
    %cst = arith.constant dense<0.000000e+00> : vector<8x32xf32>
    %2 = tpu.matmul %0, %1, %cst {dimension_numbers = #tpu.dot_dimension_numbers<[1], [0], [0], [1], [0, 0, 1, 1], [], []>} : vector<8x64xf32>, vector<64x32xf32>, vector<8x32xf32> -> vector<8x32xf32>
    %c0_3 = arith.constant 0 : index
    %c0_4 = arith.constant 0 : index
    %3 = vector.load %arg4[%c0_3, %c0_4] : memref<1x32xf32, #tpu.memory_space<vmem>>, vector<1x32xf32>
    %4 = vector.broadcast %3 : vector<1x32xf32> to vector<8x32xf32>
    %5 = arith.addf %2, %4 : vector<8x32xf32>
    %c0_5 = arith.constant 0 : index
    %c0_6 = arith.constant 0 : index
    %6 = vector.load %arg5[%c0_5, %c0_6] : memref<8x32xf32, #tpu.memory_space<vmem>>, vector<8x32xf32>
    %7 = arith.addf %5, %6 : vector<8x32xf32>
    %c0_7 = arith.constant 0 : index
    %c0_8 = arith.constant 0 : index
    %8 = vector.load %arg6[%c0_7, %c0_8] : memref<8x32xf32, #tpu.memory_space<vmem>>, vector<8x32xf32>
    tpu.vector_store %arg6[%c0_7, %c0_8], %7 {strides = array<i32>} : memref<8x32xf32, #tpu.memory_space<vmem>>, vector<8x32xf32>,
    return
  }
  func.func @transform_0(%arg0: i32, %arg1: i32) -> (i32, i32) {
    %c0_i32 = arith.constant 0 : i32
    %c0_i32_0 = arith.constant 0 : i32
    return %arg0, %c0_i32 : i32, i32
  }
  func.func @transform_1(%arg0: i32, %arg1: i32) -> (i32, i32) {
    %c0_i32 = arith.constant 0 : i32
    %c0_i32_0 = arith.constant 0 : i32
    return %c0_i32, %arg1 : i32, i32
  }
  func.func @transform_2(%arg0: i32, %arg1: i32) -> (i32, i32) {
    %c0_i32 = arith.constant 0 : i32
    %c0_i32_0 = arith.constant 0 : i32
    return %c0_i32, %arg1 : i32, i32
  }
  func.func @transform_3(%arg0: i32, %arg1: i32) -> (i32, i32) {
    %c0_i32 = arith.constant 0 : i32
    return %arg0, %arg1 : i32, i32
  }
  func.func @transform_4(%arg0: i32, %arg1: i32) -> (i32, i32) {
    %c0_i32 = arith.constant 0 : i32
    return %arg0, %arg1 : i32, i32
  }
}

module attributes {stable_mosaic.version = 11 : i64} {
  func.func @layernorm_kernel(%arg0: i32, %arg1: memref<8x32xf32, #tpu.memory_space<vmem>>, %arg2: memref<1x32xf32, #tpu.memory_space<vmem>>, %arg3: memref<1x32xf32, #tpu.memory_space<vmem>>, %arg4: memref<8x32xf32, #tpu.memory_space<vmem>>) attributes {dimension_semantics = [#tpu.dimension_semantics<parallel>], iteration_bounds = array<i64: 2>, scalar_prefetch = 0 : i64, scratch_operands = 0 : i64, tpu.core_type = #tpu.core_type<tc>, window_params = [{transform_indices = @transform_0, window_bounds = array<i64: 8, 32>}, {pipeline_mode = #tpu.pipeline_mode<synchronous>, transform_indices = @transform_1, window_bounds = array<i64: 1, 32>}, {pipeline_mode = #tpu.pipeline_mode<synchronous>, transform_indices = @transform_2, window_bounds = array<i64: 1, 32>}, {transform_indices = @transform_3, window_bounds = array<i64: 8, 32>}]} {
    %c0 = arith.constant 0 : index
    %c0_0 = arith.constant 0 : index
    %0 = vector.load %arg1[%c0, %c0_0] : memref<8x32xf32, #tpu.memory_space<vmem>>, vector<8x32xf32>
    %cst = arith.constant dense<0.000000e+00> : vector<8xf32>
    %1 = vector.multi_reduction <add>, %0, %cst [1] : vector<8x32xf32> to vector<8xf32>
    %2 = vector.shape_cast %1 : vector<8xf32> to vector<8x1xf32>
    %cst_1 = arith.constant 3.200000e+01 : f32
    %3 = vector.broadcast %cst_1 : f32 to vector<8x1xf32>
    %4 = arith.divf %2, %3 : vector<8x1xf32>
    %5 = vector.broadcast %4 : vector<8x1xf32> to vector<8x32xf32>
    %6 = arith.subf %0, %5 : vector<8x32xf32>
    %7 = arith.mulf %6, %6 : vector<8x32xf32>
    %cst_2 = arith.constant dense<0.000000e+00> : vector<8xf32>
    %8 = vector.multi_reduction <add>, %7, %cst_2 [1] : vector<8x32xf32> to vector<8xf32>
    %9 = vector.shape_cast %8 : vector<8xf32> to vector<8x1xf32>
    %cst_3 = arith.constant 3.200000e+01 : f32
    %10 = vector.broadcast %cst_3 : f32 to vector<8x1xf32>
    %11 = arith.divf %9, %10 : vector<8x1xf32>
    %cst_4 = arith.constant 9.99999974E-6 : f32
    %12 = vector.broadcast %cst_4 : f32 to vector<8x1xf32>
    %13 = arith.addf %11, %12 : vector<8x1xf32>
    %14 = math.rsqrt %13 : vector<8x1xf32>
    %15 = vector.broadcast %14 : vector<8x1xf32> to vector<8x32xf32>
    %16 = arith.mulf %6, %15 : vector<8x32xf32>
    %c0_5 = arith.constant 0 : index
    %c0_6 = arith.constant 0 : index
    %17 = vector.load %arg2[%c0_5, %c0_6] : memref<1x32xf32, #tpu.memory_space<vmem>>, vector<1x32xf32>
    %18 = vector.broadcast %17 : vector<1x32xf32> to vector<8x32xf32>
    %19 = arith.mulf %16, %18 : vector<8x32xf32>
    %c0_7 = arith.constant 0 : index
    %c0_8 = arith.constant 0 : index
    %20 = vector.load %arg3[%c0_7, %c0_8] : memref<1x32xf32, #tpu.memory_space<vmem>>, vector<1x32xf32>
    %21 = vector.broadcast %20 : vector<1x32xf32> to vector<8x32xf32>
    %22 = arith.addf %19, %21 : vector<8x32xf32>
    %c0_9 = arith.constant 0 : index
    %c0_10 = arith.constant 0 : index
    %23 = vector.load %arg4[%c0_9, %c0_10] : memref<8x32xf32, #tpu.memory_space<vmem>>, vector<8x32xf32>
    tpu.vector_store %arg4[%c0_9, %c0_10], %22 {strides = array<i32>} : memref<8x32xf32, #tpu.memory_space<vmem>>, vector<8x32xf32>,
    return
  }
  func.func @transform_0(%arg0: i32) -> (i32, i32) {
    %c0_i32 = arith.constant 0 : i32
    %c0_i32_0 = arith.constant 0 : i32
    return %arg0, %c0_i32 : i32, i32
  }
  func.func @transform_1(%arg0: i32) -> (i32, i32) {
    %c0_i32 = arith.constant 0 : i32
    %c0_i32_0 = arith.constant 0 : i32
    %c0_i32_1 = arith.constant 0 : i32
    return %c0_i32, %c0_i32_0 : i32, i32
  }
  func.func @transform_2(%arg0: i32) -> (i32, i32) {
    %c0_i32 = arith.constant 0 : i32
    %c0_i32_0 = arith.constant 0 : i32
    %c0_i32_1 = arith.constant 0 : i32
    return %c0_i32, %c0_i32_0 : i32, i32
  }
  func.func @transform_3(%arg0: i32) -> (i32, i32) {
    %c0_i32 = arith.constant 0 : i32
    %c0_i32_0 = arith.constant 0 : i32
    return %arg0, %c0_i32 : i32, i32
  }
}

</mosaic_0001>

<bundles_post_ra>
// kernel: tf_encoder_forward.15
= control target key start
LH: loop header
LB: loop body
LE: loop exit
PB: predicated region body
PF: predicated region fallthrough
CT: control target
= control target key end

     0   :  { %s582_s15 = smov 0   ;;  %s584_s16 = smov 0   ;;  %s633_s0 = inlined_call_operand.vmem [shape: f32[16,32], index: 0, kind: input, shape index: {}]   ;;  %s634_s1 = inlined_call_operand.vmem [shape: f32[32,32], index: 1, kind: input, shape index: {}]   ;;  %s635_s2 = inlined_call_operand.vmem [shape: f32[1,32], index: 2, kind: input, shape index: {}]   ;;  %s636_s3 = inlined_call_operand.vmem [shape: f32[16,32], index: 3, kind: input, shape index: {}]   ;;  %s637_s4 = inlined_call_operand.vmem [shape: f32[16,32], index: 4, kind: output, shape index: {}]  }
   0x1   :  { %s586_s17 = smov 0  }
   0x2 LB: > { %s26_s18 = sadd.s32 1, %s549_s16  ;;  %p481_p0 = scmp.ge.s32.totalorder %s553_s17, 1  ;;  %s553_s17 = sphi %s586_s17, %s14_s17   ;;  %s549_s16 = sphi %s584_s16, %s639_s16   ;;  %s545_s15 = sphi %s582_s15, %s638_s15  }
   0x3   : > { %p28_p1 = scmp.ge.s32.totalorder %s26_s18, 2  ;;  %p206_p2 = scmp.lt.s32.totalorder %s553_s17, 3 }
   0x5   : > { %s641_s18 = smov (%p28_p1, %s26_s18), 0  ;;  %p207_p3 = pnand %p481_p0, %p206_p2 }
   0x6   : > { %p247_p4 = scmp.lt.s32.totalorder (!%p207_p3), %s545_s15, 1 }
   0x7   : > { %210 = sbr.rel (%p207_p3) target bundleno = 219 (0xdb), region = 36 }
   0xc   : > { %v276_v0 = vld [vmem:[%s634_s1 + $0x18] sm:$0xff]  ;;  %v555_v1 = vmov 0.0   ;;  %v275_v2 = vld [vmem:[%s634_s1 + $0x10] sm:$0xff]  ;;  %vm556_vm0 = vmmov 0   ;;  %s643_s15 = smov (!%p247_p4, %s545_s15), 1  ;;  %v274_v3 = vld [vmem:[%s634_s1 + $0x8] sm:$0xff] }
   0xd   : > { %494 = vmatprep.subr.mxu0 %v555_v1  ;;  %502 = vmatprep.mubr.msk.f32.mxu0 %vm556_vm0, %v555_v1  ;;  %s482_s25 = sshll.u32 %s643_s15, 3  ;;  %v273_v4 = vld [vmem:[%s634_s1] sm:$0xff]  ;;  %vm284_vm1 = vcmask 261120  }
   0xe   : > { %495 = vmatpush3.msra.mxu0 %v276_v0  ;;  %s250_s30 = scalar_lea.vmem %s633_s0, %s482_s25  ;;  %s264_s7 = scalar_lea.vmem %s636_s3, %s482_s25  ;;  %v485_v6 = vld [vmem:[%s635_s2] ss:$0 sm:$0xff] }
   0xf   : > { %496 = vmatprep.subr.mxu0 %v555_v1  ;;  %v272_v5 = vld [vmem:[%s250_s30] sm:$0xff]  ;;  %s271_s12 = scalar_lea.vmem %s637_s4, %s482_s25 }
  0x10   : > { %497 = vmatpush3.msra.mxu0 %v275_v2  ;;  %v358_v8 = vld [vmem:[%s264_s7] sm:$0xff] }
  0x11   : > { %498 = vmatprep.subr.mxu0 %v555_v1 }
  0x12   : > { %499 = vmatpush3.msra.mxu0 %v274_v3 }
  0x13   : > { %500 = vmatprep.subr.mxu0 %v555_v1 }
  0x14   : > { %501 = vmatpush3.msra.mxu0 %v273_v4 }
  0x15   : > { %503 = vmatmul.mubr.msk.f32.vlgmr.msra.gmra.mxu0 %vm284_vm1, %v272_v5 }
  0xd5   : > { %v354_v7 = vpop.f32.mrf.mxu0 }
  0xd6   : > { %v355_v9 = vadd.f32 %v485_v6, %v354_v7 }
  0xd7   : > { %v504_v10 = vpop.f32.mrf.mxu0 }
  0xd8   : > { %v359_v11 = vadd.f32 %v358_v8, %v355_v9 }
  0xda   : > { %360 = vst.msk [vmem:[%s271_s12] sm:$0xff] %vm284_vm1, %v359_v11 }
  0xdb PF: > { %s14_s17 = sadd.s32 1, %s553_s17   ;;  %s638_s15 = smov %s549_s16 }
  0xdc   : > { %p11_p5 = scmp.ge.s32.totalorder %s14_s17, 4   ;;  %s639_s16 = smov %s641_s18 }
  0xde   :  { %13 = sbr.rel (!%p11_p5) target bundleno = 2 (0x2), region = 75 }

// kernel: tf_encoder_forward.12
= control target key start
LH: loop header
LB: loop body
LE: loop exit
PB: predicated region body
PF: predicated region fallthrough
CT: control target
= control target key end

     0   :  { %s219_s9 = smov 0   ;;  %s247_s0 = inlined_call_operand.vmem [shape: f32[2,8,32], index: 0, kind: input, shape index: {}]   ;;  %s248_s1 = inlined_call_operand.vmem [shape: f32[8,32], index: 1, kind: input, shape index: {}]   ;;  %s249_s2 = inlined_call_operand.vmem [shape: f32[2,8,32], index: 2, kind: output, shape index: {}]  }
   0x1 LB: > { %s198_s10 = sadd.s32 4294967295, %s221_s9   ;;  %p202_p0 = scmp.ge.s32.totalorder %s221_s9, 1  ;;  %s221_s9 = sphi %s219_s9, %s12_s9  }
   0x2   : > { %p111_p1 = scmp.lt.s32.totalorder %s221_s9, 3 }
   0x4   : > { %p112_p2 = pnand %p202_p0, %p111_p1 }
   0x5   : > { %p131_p3 = scmp.lt.s32.totalorder (!%p112_p2), %s198_s10, 1 }
   0x6   : > { %115 = sbr.rel (%p112_p2) target bundleno = 20 (0x14), region = 28 }
   0xb   : > { %s251_s10 = smov (!%p131_p3, %s198_s10), 1  ;;  %v141_v1 = vld [vmem:[%s248_s1] sm:$0xff]  ;;  %vm143_vm0 = vcmask 261120  }
   0xc   : > { %s203_s11 = sshll.u32 %s251_s10, 3 }
   0xd   : > { %s134_s14 = scalar_lea.vmem %s247_s0, %s203_s11  ;;  %s138_s19 = scalar_lea.vmem %s249_s2, %s203_s11 }
   0xe   : > { %v139_v0 = vld [vmem:[%s134_s14] sm:$0xff] }
   0xf   : > { %v140_v2 = vmul.f32 5.656854, %v139_v0 }
  0x11   : > { %v142_v3 = vadd.f32 %v141_v1, %v140_v2 }
  0x13   : > { %144 = vst.msk [vmem:[%s138_s19] sm:$0xff] %vm143_vm0, %v142_v3 }
  0x14 PF: > { %s12_s9 = sadd.s32 1, %s221_s9  }
  0x15   : > { %p9_p4 = scmp.ge.s32.totalorder %s12_s9, 4  }
  0x17   :  { %11 = sbr.rel (!%p9_p4) target bundleno = 1 (0x1), region = 58 }

// kernel: tf_encoder_forward.13
= control target key start
LH: loop header
LB: loop body
LE: loop exit
PB: predicated region body
PF: predicated region fallthrough
CT: control target
= control target key end

     0   :  { %s603_s18 = smov 0   ;;  %s605_s19 = smov 0   ;;  %s667_s0 = inlined_call_operand.vmem [shape: f32[16,32], index: 0, kind: input, shape index: {}]   ;;  %s668_s1 = inlined_call_operand.vmem [shape: f32[1,32], index: 1, kind: input, shape index: {}]   ;;  %s669_s2 = inlined_call_operand.vmem [shape: f32[1,32], index: 2, kind: input, shape index: {}]   ;;  %s670_s3 = inlined_call_operand.vmem [shape: f32[32,96], index: 3, kind: input, shape index: {}]   ;;  %s671_s4 = inlined_call_operand.vmem [shape: f32[1,96], index: 4, kind: input, shape index: {}]   ;;  %s672_s5 = inlined_call_operand.vmem [shape: f32[16,96], index: 5, kind: output, shape index: {}]  }
   0x1   :  { %s607_s20 = smov 0  }
   0x2 LB: > { %s27_s21 = sadd.s32 1, %s565_s19  ;;  %p494_p0 = scmp.ge.s32.totalorder %s569_s20, 1  ;;  %s569_s20 = sphi %s607_s20, %s15_s20   ;;  %s565_s19 = sphi %s605_s19, %s674_s19   ;;  %s561_s18 = sphi %s603_s18, %s673_s18  }
   0x3   : > { %p29_p1 = scmp.ge.s32.totalorder %s27_s21, 2  ;;  %p217_p2 = scmp.lt.s32.totalorder %s569_s20, 3 }
   0x5   : > { %s676_s21 = smov (%p29_p1, %s27_s21), 0  ;;  %p218_p3 = pnand %p494_p0, %p217_p2 }
   0x6   : > { %p253_p4 = scmp.lt.s32.totalorder (!%p218_p3), %s561_s18, 1 }
   0x7   : > { %221 = sbr.rel (%p218_p3) target bundleno = 520 (0x208), region = 40 }
   0xc   : > { %s678_s18 = smov (!%p253_p4, %s561_s18), 1  ;;  %vm272_vm0 = vcmask 261120   ;;  %v306_v7 = vld [vmem:[%s670_s3 + $0x18] sm:$0xff]  ;;  %v571_v8 = vmov 0.0   ;;  %v305_v9 = vld [vmem:[%s670_s3 + $0x10] sm:$0xff]  ;;  %vm572_vm1 = vmmov 0  }
   0xd   : > { %s495_s22 = sshll.u32 %s678_s18, 3  ;;  %508 = vmatprep.subr.mxu0 %v571_v8  ;;  %516 = vmatprep.mubr.msk.f32.mxu0 %vm572_vm1, %v571_v8  ;;  %v304_v10 = vld [vmem:[%s670_s3 + $0x8] sm:$0xff]  ;;  %v303_v11 = vld [vmem:[%s670_s3] sm:$0xff]  ;;  %vm387_vm2 = vcmask 785408  }
   0xe   : > { %s256_s25 = scalar_lea.vmem %s667_s0, %s495_s22  ;;  %509 = vmatpush3.msra.mxu0 %v306_v7  ;;  %v497_v16 = vld [vmem:[%s668_s1] ss:$0 sm:$0xff]  ;;  %s270_s17 = scalar_lea.vmem %s672_s5, %s495_s22 }
   0xf   : > { %v271_v0 = vld [vmem:[%s256_s25] sm:$0xff]  ;;  %510 = vmatprep.subr.mxu0 %v571_v8 }
  0x10   : > { %v273_v1 = vsel %vm272_vm0, %v271_v0, 0.0  ;;  %511 = vmatpush3.msra.mxu0 %v305_v9  ;;  %v498_v18 = vld [vmem:[%s669_s2] ss:$0 sm:$0xff] }
  0x11   : > { %274 = vadd.xlane.f32.xlu0 %v273_v1  ;;  %512 = vmatprep.subr.mxu0 %v571_v8  ;;  %v499_v21 = vld [vmem:[%s671_s4] ss:$0 sm:$0xff] }
  0x12   : > { %513 = vmatpush3.msra.mxu0 %v304_v10 }
  0x13   : > { %514 = vmatprep.subr.mxu0 %v571_v8 }
  0x14   : > { %515 = vmatpush3.msra.mxu0 %v303_v11 }
  0x9a   : > { %v275_v2 = vpop.xlane.xlu0 %274 }
  0x9b   : > { %v277_v3 = vmul.f32 0.03125, %v275_v2 }
  0x9d   : > { %v278_v4 = vsub.f32 %v271_v0, %v277_v3 }
  0x9f   : > { %v279_v5 = vmul.f32 %v278_v4, %v278_v4 }
  0xa1   : > { %v280_v6 = vsel %vm272_vm0, %v279_v5, 0.0 }
  0xa2   : > { %281 = vadd.xlane.f32.xlu0 %v280_v6 }
 0x12b   : > { %v282_v12 = vpop.xlane.xlu0 %281 }
 0x12c   : > { %v283_v13 = vmul.f32 0.03125, %v282_v12 }
 0x12e   : > { %v284_v14 = vadd.f32 1e-05, %v283_v13 }
 0x130   : > { %545 = vrsqrt.f32 %v284_v14 }
 0x13d   : > { %v546_v15 = vpop.eup %545 }
 0x13e   : > { %v286_v17 = vmul.f32 %v546_v15, %v278_v4 }
 0x140   : > { %v294_v19 = vmul.f32 %v497_v16, %v286_v17 }
 0x142   : > { %v302_v20 = vadd.f32 %v498_v18, %v294_v19 }
 0x144   : > { %517 = vmatmul.mubr.msk.f32.vlgmr.msra.gmra.mxu0 %vm272_vm0, %v302_v20 }
 0x204   : > { %v383_v22 = vpop.f32.mrf.mxu0 }
 0x205   : > { %v384_v23 = vadd.f32 %v499_v21, %v383_v22 }
 0x206   : > { %v518_v24 = vpop.f32.mrf.mxu0 }
 0x207   : > { %388 = vst.msk [vmem:[%s270_s17] sm:$0xff] %vm387_vm2, %v384_v23 }
 0x208 PF: > { %s15_s20 = sadd.s32 1, %s569_s20   ;;  %s673_s18 = smov %s565_s19 }
 0x209   : > { %p12_p5 = scmp.ge.s32.totalorder %s15_s20, 4   ;;  %s674_s19 = smov %s676_s21 }
 0x20b   :  { %14 = sbr.rel (!%p12_p5) target bundleno = 2 (0x2), region = 76 }

// kernel: tf_encoder_forward.14
= control target key start
LH: loop header
LB: loop body
LE: loop exit
PB: predicated region body
PF: predicated region fallthrough
CT: control target
= control target key end

     0   :  { %s998_s6 = smov 0   ;;  %s1081_s0 = inlined_call_operand.vmem [shape: f32[2,8,96], index: 0, kind: input, shape index: {}]   ;;  %s1082_s1 = inlined_call_operand.vmem [shape: f32[2,8,32], index: 1, kind: output, shape index: {}]  }
   0x1 LB: > { %s847_s7 = sadd.s32 4294967295, %s970_s6   ;;  %p851_p0 = scmp.ge.s32.totalorder %s970_s6, 1  ;;  %s970_s6 = sphi %s998_s6, %s11_s6  }
   0x2   : > { %p86_p1 = scmp.lt.s32.totalorder %s970_s6, 3 }
   0x4   : > { %p87_p2 = pnand %p851_p0, %p86_p1 }
   0x5   : > { %p104_p3 = scmp.lt.s32.totalorder (!%p87_p2), %s847_s7, 1  ;;  %s974_s12 = smov (!%p87_p2), 96  }
   0x6   : > { %90 = sbr.rel (%p87_p2) target bundleno = 1465 (0x5b9), region = 24  ;;  %s975_s13 = smov (!%p87_p2), 64  }
   0x7   : > { %s976_s14 = smov (!%p87_p2), 88   ;;  %s977_s15 = smov (!%p87_p2), 120  }
   0x8   : > { %s978_s16 = smov (!%p87_p2), 80   ;;  %s979_s17 = smov (!%p87_p2), 72  }
   0x9   : > { %s980_s18 = smov (!%p87_p2), 112   ;;  %s981_s19 = smov (!%p87_p2), 104  }
   0xa   : > { %s982_s20 = smov (!%p87_p2), 56   ;;  %s983_s21 = smov (!%p87_p2), 40  }
   0xb   : > { %v972_v0 = vmov 0.0   ;;  %vm973_vm0 = vmmov 0   ;;  %s1084_s7 = smov (!%p104_p3, %s847_s7), 1  ;;  %vm117_vm1 = vcmask 64512   ;;  %s984_s22 = smov 48   ;;  %vm788_vm2 = vcmask 130048  }
   0xc   : > { %884 = vmatprep.subr.mxu0 %v972_v0  ;;  %886 = vmatprep.mubr.msk.f32.mxu0 %vm973_vm0, %v972_v0  ;;  %s852_s8 = sshll.u32 %s1084_s7, 3  ;;  %s985_s23 = smov 8   ;;  %vm790_vm3 = vcmask 195584   ;;  %vm792_vm4 = vcmask 261120  }
   0xd   : > { %889 = vmatprep.subr.mxu1 %v972_v0  ;;  %891 = vmatprep.mubr.msk.f32.mxu1 %vm973_vm0, %v972_v0  ;;  %s107_s11 = scalar_lea.vmem %s1081_s0, %s852_s8  ;;  %s986_s24 = smov 16  }
   0xe   : > { %v1020_v1 = vld [vmem:[%s107_s11] sm:$0xff]  ;;  %s987_s25 = smov 24   ;;  %s111_s28 = scalar_lea.vmem %s1082_s1, %s852_s8 }
   0xf   : > { %115 = vrot.lane.b32.xlu0 %v1020_v1, %s974_s12  ;;  %v113_v3 = vmul.f32 0.35355338, %v1020_v1  ;;  %204 = vrot.lane.b32.xlu1 %v1020_v1, %s975_s13 }
  0x13   : > { %282 = vrot.lane.b32.xlu1 %v1020_v1, %s976_s14 }
  0x17   : > { %280 = vrot.lane.b32.xlu1 %v113_v3, %s977_s15 }
  0x1b   : > { %447 = vrot.lane.b32.xlu1 %v1020_v1, %s978_s16 }
  0x81   : > { %v116_v2 = vpop.permute.xlu0 %115  ;;  %v205_v7 = vpop.permute.xlu1 %204 }
  0x82   : > { %885 = vmatpush3.xpose.msk.msra.mxu0 %vm117_vm1, %v116_v2  ;;  %890 = vmatpush3.msra.mxu1 %v205_v7 }
  0x83   : > { %899 = vmatprep.subr.mxu0 %v972_v0  ;;  %894 = vmatprep.subr.mxu1 %v972_v0 }
  0x85   : > { %887 = vmatmul.mubr.msk.f32.vlgmr.msra.gmra.mxu0 %vm117_vm1, %v113_v3  ;;  %v283_v13 = vpop.permute.xlu1 %282 }
  0x86   : > { %901 = vmatprep.mubr.msk.f32.mxu0 %vm973_vm0, %v972_v0 }
  0x89   : > { %v281_v14 = vpop.permute.xlu1 %280 }
  0x8d   : > { %v448_v15 = vpop.permute.xlu1 %447 }
 0x145   : > { %v189_v4 = vpop.f32.mrf.mxu0 }
 0x146   : > { %v193_v5 = vsel %vm117_vm1, %v189_v4, -inf }
 0x147   : > { %194 = vmax.xlane.f32.xlu0 %v193_v5  ;;  %v888_v6 = vpop.f32.mrf.mxu0 }
 0x15d   : > { %612 = vrot.lane.b32.xlu0 %v1020_v1, %s979_s17 }
 0x1d0   : > { %v195_v8 = vpop.xlane.xlu0 %194 }
 0x1d1   : > { %v196_v9 = vsub.f32 %v189_v4, %v195_v8 }
 0x1d3   : > { %v197_v10 = vmul.f32 1.442695, %v196_v9 }
 0x1d4   : > { %v613_v20 = vpop.permute.xlu0 %612 }
 0x1d5   : > { %948 = vpow2.f32 %v197_v10 }
 0x1e2   : > { %v949_v11 = vpop.eup %948 }
 0x1e3   : > { %v199_v12 = vsel %vm117_vm1, %v949_v11, 0.0 }
 0x1e4   : > { %200 = vadd.xlane.f32.xlu1 %v199_v12 }
 0x1f5   : > { %445 = vrot.lane.b32.xlu1 %v113_v3, %s980_s18 }
 0x1f9   : > { %610 = vrot.lane.b32.xlu1 %v113_v3, %s981_s19 }
 0x26d   : > { %v201_v16 = vpop.xlane.xlu1 %200 }
 0x26e   : > { %950 = vrcp.f32 %v201_v16 }
 0x271   : > { %v446_v19 = vpop.permute.xlu1 %445 }
 0x275   : > { %v611_v21 = vpop.permute.xlu1 %610 }
 0x27b   : > { %v951_v17 = vpop.eup %950 }
 0x27c   : > { %v203_v18 = vmul.f32 %v951_v17, %v949_v11 }
 0x27e   : > { %892 = vmatmul.mubr.msk.f32.vlgmr.msra.gmra.mxu1 %vm117_vm1, %v203_v18 }
 0x27f   : > { %895 = vmatpush3.xpose.msk.msra.mxu1 %vm117_vm1, %v283_v13  ;;  %896 = vmatprep.mubr.msk.f32.mxu1 %vm973_vm0, %v972_v0 }
 0x280   : > { %904 = vmatprep.subr.mxu1 %v972_v0 }
 0x282   : > { %897 = vmatmul.mubr.msk.f32.vlgmr.msra.gmra.mxu1 %vm117_vm1, %v281_v14 }
 0x283   : > { %905 = vmatpush3.xpose.msk.msra.mxu1 %vm117_vm1, %v448_v15  ;;  %906 = vmatprep.mubr.msk.f32.mxu1 %vm973_vm0, %v972_v0 }
 0x284   : > { %914 = vmatprep.subr.mxu1 %v972_v0 }
 0x286   : > { %907 = vmatmul.mubr.msk.f32.vlgmr.msra.gmra.mxu1 %vm117_vm1, %v446_v19 }
 0x287   : > { %915 = vmatpush3.xpose.msk.msra.mxu1 %vm117_vm1, %v613_v20  ;;  %916 = vmatprep.mubr.msk.f32.mxu1 %vm973_vm0, %v972_v0 }
 0x28a   : > { %917 = vmatmul.mubr.msk.f32.vlgmr.msra.gmra.mxu1 %vm117_vm1, %v611_v21 }
 0x33e   : > { %v1051_v22 = vpop.f32.mrf.mxu1 }
 0x340   : > { %v893_v23 = vpop.f32.mrf.mxu1 }
 0x342   : > { %v354_v24 = vpop.f32.mrf.mxu1 }
 0x343   : > { %v358_v25 = vsel %vm117_vm1, %v354_v24, -inf }
 0x344   : > { %359 = vmax.xlane.f32.xlu1 %v358_v25  ;;  %v898_v26 = vpop.f32.mrf.mxu1 }
 0x346   : > { %v519_v27 = vpop.f32.mrf.mxu1 }
 0x347   : > { %v523_v28 = vsel %vm117_vm1, %v519_v27, -inf }
 0x348   : > { %524 = vmax.xlane.f32.xlu0 %v523_v28  ;;  %v908_v29 = vpop.f32.mrf.mxu1 }
 0x34a   : > { %v684_v30 = vpop.f32.mrf.mxu1 }
 0x34b   : > { %v688_v31 = vsel %vm117_vm1, %v684_v30, -inf }
 0x34c   : > { %689 = vmax.xlane.f32.xlu1 %v688_v31  ;;  %v918_v32 = vpop.f32.mrf.mxu1 }
 0x35d   : > { %369 = vrot.lane.b32.xlu1 %v1020_v1, %s982_s20 }
 0x3cd   : > { %v360_v33 = vpop.xlane.xlu1 %359 }
 0x3ce   : > { %v361_v34 = vsub.f32 %v354_v24, %v360_v33 }
 0x3d0   : > { %v362_v35 = vmul.f32 1.442695, %v361_v34 }
 0x3d1   : > { %v525_v36 = vpop.xlane.xlu0 %524 }
 0x3d2   : > { %952 = vpow2.f32 %v362_v35  ;;  %v526_v37 = vsub.f32 %v519_v27, %v525_v36 }
 0x3d4   : > { %v527_v38 = vmul.f32 1.442695, %v526_v37 }
 0x3d5   : > { %v690_v39 = vpop.xlane.xlu1 %689 }
 0x3d6   : > { %954 = vpow2.f32 %v527_v38  ;;  %v691_v40 = vsub.f32 %v684_v30, %v690_v39 }
 0x3d8   : > { %v692_v41 = vmul.f32 1.442695, %v691_v40 }
 0x3d9   : > { %v370_v42 = vpop.permute.xlu1 %369 }
 0x3da   : > { %956 = vpow2.f32 %v692_v41  ;;  %900 = vmatpush3.msra.mxu0 %v370_v42 }
 0x3db   : > { %909 = vmatprep.subr.mxu0 %v972_v0 }
 0x3df   : > { %v953_v43 = vpop.eup %952 }
 0x3e0   : > { %v364_v44 = vsel %vm117_vm1, %v953_v43, 0.0 }
 0x3e1   : > { %365 = vadd.xlane.f32.xlu1 %v364_v44 }
 0x3e3   : > { %v955_v45 = vpop.eup %954 }
 0x3e4   : > { %v529_v46 = vsel %vm117_vm1, %v955_v45, 0.0 }
 0x3e5   : > { %530 = vadd.xlane.f32.xlu1 %v529_v46 }
 0x3e7   : > { %v957_v47 = vpop.eup %956 }
 0x3e8   : > { %v694_v48 = vsel %vm117_vm1, %v957_v47, 0.0 }
 0x3e9   : > { %695 = vadd.xlane.f32.xlu0 %v694_v48 }
 0x3f6   : > { %699 = vrot.lane.b32.xlu1 %v1020_v1, %s983_s21 }
 0x3ff   : > { %534 = vrot.lane.b32.xlu0 %v1020_v1, %s984_s22 }
 0x46a   : > { %v366_v49 = vpop.xlane.xlu1 %365 }
 0x46b   : > { %958 = vrcp.f32 %v366_v49 }
 0x46e   : > { %v531_v50 = vpop.xlane.xlu1 %530 }
 0x46f   : > { %960 = vrcp.f32 %v531_v50 }
 0x472   : > { %v696_v51 = vpop.xlane.xlu0 %695  ;;  %v700_v56 = vpop.permute.xlu1 %699 }
 0x473   : > { %962 = vrcp.f32 %v696_v51 }
 0x476   : > { %v535_v53 = vpop.permute.xlu0 %534 }
 0x478   : > { %v959_v52 = vpop.eup %958 }
 0x479   : > { %v368_v54 = vmul.f32 %v959_v52, %v953_v43 }
 0x47b   : > { %902 = vmatmul.mubr.msk.f32.vlgmr.msra.gmra.mxu0 %vm117_vm1, %v368_v54 }
 0x47c   : > { %v961_v55 = vpop.eup %960  ;;  %910 = vmatpush3.msra.mxu0 %v535_v53  ;;  %911 = vmatprep.mubr.msk.f32.mxu0 %vm973_vm0, %v972_v0 }
 0x47d   : > { %919 = vmatprep.subr.mxu0 %v972_v0  ;;  %v533_v57 = vmul.f32 %v961_v55, %v955_v45 }
 0x47f   : > { %912 = vmatmul.mubr.msk.f32.vlgmr.msra.gmra.mxu0 %vm117_vm1, %v533_v57 }
 0x480   : > { %v963_v58 = vpop.eup %962  ;;  %920 = vmatpush3.msra.mxu0 %v700_v56  ;;  %921 = vmatprep.mubr.msk.f32.mxu0 %vm973_vm0, %v972_v0 }
 0x481   : > { %v698_v59 = vmul.f32 %v963_v58, %v957_v47 }
 0x483   : > { %922 = vmatmul.mubr.msk.f32.vlgmr.msra.gmra.mxu0 %vm117_vm1, %v698_v59 }
 0x53b   : > { %v441_v60 = vpop.f32.mrf.mxu0 }
 0x53c   : > { %776 = vrot.lane.b32.xlu1 %v441_v60, %s985_s23 }
 0x53d   : > { %v903_v61 = vpop.f32.mrf.mxu0 }
 0x53f   : > { %v606_v62 = vpop.f32.mrf.mxu0 }
 0x540   : > { %780 = vrot.lane.b32.xlu0 %v606_v62, %s986_s24 }
 0x541   : > { %v913_v63 = vpop.f32.mrf.mxu0 }
 0x543   : > { %v771_v1 = vpop.f32.mrf.mxu0 }
 0x544   : > { %784 = vrot.lane.b32.xlu1 %v771_v1, %s987_s25 }
 0x545   : > { %v923_v2 = vpop.f32.mrf.mxu0 }
 0x5ae   : > { %v777_v3 = vpop.permute.xlu1 %776 }
 0x5af   : > { %v787_v0 = vsel %vm117_vm1, %v1051_v22, %v777_v3 }
 0x5b2   : > { %v781_v4 = vpop.permute.xlu0 %780 }
 0x5b3   : > { %v789_v5 = vsel %vm788_vm2, %v787_v0, %v781_v4 }
 0x5b6   : > { %v785_v6 = vpop.permute.xlu1 %784 }
 0x5b7   : > { %v791_v7 = vsel %vm790_vm3, %v789_v5, %v785_v6 }
 0x5b8   : > { %793 = vst.msk [vmem:[%s111_s28] sm:$0xff] %vm792_vm4, %v791_v7 }
 0x5b9 PF: > { %s11_s6 = sadd.s32 1, %s970_s6  }
 0x5ba   : > { %p8_p4 = scmp.ge.s32.totalorder %s11_s6, 4  }
 0x5bc   :  { %10 = sbr.rel (!%p8_p4) target bundleno = 1 (0x1), region = 54 }

// kernel: tf_encoder_forward.17
= control target key start
LH: loop header
LB: loop body
LE: loop exit
PB: predicated region body
PF: predicated region fallthrough
CT: control target
= control target key end

     0   :  { %s599_s15 = smov 0   ;;  %s601_s16 = smov 0   ;;  %s662_s0 = inlined_call_operand.vmem [shape: f32[16,64], index: 0, kind: input, shape index: {}]   ;;  %s663_s1 = inlined_call_operand.vmem [shape: f32[64,32], index: 1, kind: input, shape index: {}]   ;;  %s664_s2 = inlined_call_operand.vmem [shape: f32[1,32], index: 2, kind: input, shape index: {}]   ;;  %s665_s3 = inlined_call_operand.vmem [shape: f32[16,32], index: 3, kind: input, shape index: {}]   ;;  %s666_s4 = inlined_call_operand.vmem [shape: f32[16,32], index: 4, kind: output, shape index: {}]  }
   0x1   :  { %s603_s17 = smov 0  }
   0x2 LB: > { %s26_s18 = sadd.s32 1, %s566_s16  ;;  %p486_p0 = scmp.ge.s32.totalorder %s570_s17, 1  ;;  %s570_s17 = sphi %s603_s17, %s14_s17   ;;  %s566_s16 = sphi %s601_s16, %s668_s16   ;;  %s562_s15 = sphi %s599_s15, %s667_s15  }
   0x3   : > { %p28_p1 = scmp.ge.s32.totalorder %s26_s18, 2  ;;  %p206_p2 = scmp.lt.s32.totalorder %s570_s17, 3 }
   0x5   : > { %s670_s18 = smov (%p28_p1, %s26_s18), 0  ;;  %p207_p3 = pnand %p486_p0, %p206_p2 }
   0x6   : > { %p247_p4 = scmp.lt.s32.totalorder (!%p207_p3), %s562_s15, 1 }
   0x7   : > { %210 = sbr.rel (%p207_p3) target bundleno = 227 (0xe3), region = 36 }
   0xc   : > { %v280_v0 = vld [vmem:[%s663_s1 + $0x38] sm:$0xff]  ;;  %v572_v1 = vmov 0.0   ;;  %v279_v2 = vld [vmem:[%s663_s1 + $0x30] sm:$0xff]  ;;  %vm573_vm0 = vmmov 0   ;;  %v278_v3 = vld [vmem:[%s663_s1 + $0x28] sm:$0xff]  ;;  %s672_s15 = smov (!%p247_p4, %s562_s15), 1 }
   0xd   : > { %503 = vmatprep.subr.mxu0 %v572_v1  ;;  %519 = vmatprep.mubr.msk.f32.mxu0 %vm573_vm0, %v572_v1  ;;  %v277_v4 = vld [vmem:[%s663_s1 + $0x20] sm:$0xff]  ;;  %v276_v5 = vld [vmem:[%s663_s1 + $0x18] sm:$0xff]  ;;  %s487_s29 = sshll.u32 %s672_s15, 3  ;;  %v275_v6 = vld [vmem:[%s663_s1 + $0x10] sm:$0xff]  ;;  %vm288_vm1 = vcmask 523264   ;;  %vm364_vm2 = vcmask 261120  }
   0xe   : > { %504 = vmatpush3.msra.mxu0 %v280_v0  ;;  %v274_v7 = vld [vmem:[%s663_s1 + $0x8] sm:$0xff]  ;;  %s250_s10 = scalar_lea.vmem %s662_s0, %s487_s29  ;;  %v273_v8 = vld [vmem:[%s663_s1] sm:$0xff]  ;;  %s264_s15 = scalar_lea.vmem %s665_s3, %s487_s29 }
   0xf   : > { %505 = vmatprep.subr.mxu0 %v572_v1  ;;  %v272_v9 = vld [vmem:[%s250_s10] sm:$0xff]  ;;  %s271_s23 = scalar_lea.vmem %s666_s4, %s487_s29 }
  0x10   : > { %506 = vmatpush3.msra.mxu0 %v279_v2  ;;  %v490_v10 = vld [vmem:[%s664_s2] ss:$0 sm:$0xff] }
  0x11   : > { %507 = vmatprep.subr.mxu0 %v572_v1  ;;  %v362_v12 = vld [vmem:[%s264_s15] sm:$0xff] }
  0x12   : > { %508 = vmatpush3.msra.mxu0 %v278_v3 }
  0x13   : > { %509 = vmatprep.subr.mxu0 %v572_v1 }
  0x14   : > { %510 = vmatpush3.msra.mxu0 %v277_v4 }
  0x15   : > { %511 = vmatprep.subr.mxu0 %v572_v1 }
  0x16   : > { %512 = vmatpush3.msra.mxu0 %v276_v5 }
  0x17   : > { %513 = vmatprep.subr.mxu0 %v572_v1 }
  0x18   : > { %514 = vmatpush3.msra.mxu0 %v275_v6 }
  0x19   : > { %515 = vmatprep.subr.mxu0 %v572_v1 }
  0x1a   : > { %516 = vmatpush3.msra.mxu0 %v274_v7 }
  0x1b   : > { %517 = vmatprep.subr.mxu0 %v572_v1 }
  0x1c   : > { %518 = vmatpush3.msra.mxu0 %v273_v8 }
  0x1d   : > { %520 = vmatmul.mubr.msk.f32.vlgmr.msra.gmra.mxu0 %vm288_vm1, %v272_v9 }
  0xdd   : > { %v358_v11 = vpop.f32.mrf.mxu0 }
  0xde   : > { %v359_v13 = vadd.f32 %v490_v10, %v358_v11 }
  0xdf   : > { %v521_v14 = vpop.f32.mrf.mxu0 }
  0xe0   : > { %v363_v15 = vadd.f32 %v362_v12, %v359_v13 }
  0xe2   : > { %365 = vst.msk [vmem:[%s271_s23] sm:$0xff] %vm364_vm2, %v363_v15 }
  0xe3 PF: > { %s14_s17 = sadd.s32 1, %s570_s17   ;;  %s667_s15 = smov %s566_s16 }
  0xe4   : > { %p11_p5 = scmp.ge.s32.totalorder %s14_s17, 4   ;;  %s668_s16 = smov %s670_s18 }
  0xe6   :  { %13 = sbr.rel (!%p11_p5) target bundleno = 2 (0x2), region = 75 }

// kernel: tf_encoder_forward.16
= control target key start
LH: loop header
LB: loop body
LE: loop exit
PB: predicated region body
PF: predicated region fallthrough
CT: control target
= control target key end

     0   :  { %s604_s18 = smov 0   ;;  %s606_s19 = smov 0   ;;  %s668_s0 = inlined_call_operand.vmem [shape: f32[16,32], index: 0, kind: input, shape index: {}]   ;;  %s669_s1 = inlined_call_operand.vmem [shape: f32[1,32], index: 1, kind: input, shape index: {}]   ;;  %s670_s2 = inlined_call_operand.vmem [shape: f32[1,32], index: 2, kind: input, shape index: {}]   ;;  %s671_s3 = inlined_call_operand.vmem [shape: f32[32,64], index: 3, kind: input, shape index: {}]   ;;  %s672_s4 = inlined_call_operand.vmem [shape: f32[1,64], index: 4, kind: input, shape index: {}]   ;;  %s673_s5 = inlined_call_operand.vmem [shape: f32[16,64], index: 5, kind: output, shape index: {}]  }
   0x1   :  { %s608_s20 = smov 0  }
   0x2 LB: > { %s27_s21 = sadd.s32 1, %s566_s19  ;;  %p495_p0 = scmp.ge.s32.totalorder %s570_s20, 1  ;;  %s570_s20 = sphi %s608_s20, %s15_s20   ;;  %s566_s19 = sphi %s606_s19, %s675_s19   ;;  %s562_s18 = sphi %s604_s18, %s674_s18  }
   0x3   : > { %p29_p1 = scmp.ge.s32.totalorder %s27_s21, 2  ;;  %p217_p2 = scmp.lt.s32.totalorder %s570_s20, 3 }
   0x5   : > { %s677_s21 = smov (%p29_p1, %s27_s21), 0  ;;  %p218_p3 = pnand %p495_p0, %p217_p2 }
   0x6   : > { %p253_p4 = scmp.lt.s32.totalorder (!%p218_p3), %s562_s18, 1 }
   0x7   : > { %221 = sbr.rel (%p218_p3) target bundleno = 522 (0x20a), region = 40 }
   0xc   : > { %s679_s18 = smov (!%p253_p4, %s562_s18), 1  ;;  %vm272_vm0 = vcmask 261120   ;;  %v306_v7 = vld [vmem:[%s671_s3 + $0x18] sm:$0xff]  ;;  %v572_v8 = vmov 0.0   ;;  %v305_v9 = vld [vmem:[%s671_s3 + $0x10] sm:$0xff]  ;;  %vm573_vm1 = vmmov 0  }
   0xd   : > { %s496_s22 = sshll.u32 %s679_s18, 3  ;;  %509 = vmatprep.subr.mxu0 %v572_v8  ;;  %517 = vmatprep.mubr.msk.f32.mxu0 %vm573_vm1, %v572_v8  ;;  %v304_v10 = vld [vmem:[%s671_s3 + $0x8] sm:$0xff]  ;;  %v303_v11 = vld [vmem:[%s671_s3] sm:$0xff]  ;;  %vm388_vm2 = vcmask 523264  }
   0xe   : > { %s256_s25 = scalar_lea.vmem %s668_s0, %s496_s22  ;;  %510 = vmatpush3.msra.mxu0 %v306_v7  ;;  %v498_v16 = vld [vmem:[%s669_s1] ss:$0 sm:$0xff]  ;;  %s270_s17 = scalar_lea.vmem %s673_s5, %s496_s22 }
   0xf   : > { %v271_v0 = vld [vmem:[%s256_s25] sm:$0xff]  ;;  %511 = vmatprep.subr.mxu0 %v572_v8 }
  0x10   : > { %v273_v1 = vsel %vm272_vm0, %v271_v0, 0.0  ;;  %512 = vmatpush3.msra.mxu0 %v305_v9  ;;  %v499_v18 = vld [vmem:[%s670_s2] ss:$0 sm:$0xff] }
  0x11   : > { %274 = vadd.xlane.f32.xlu0 %v273_v1  ;;  %513 = vmatprep.subr.mxu0 %v572_v8  ;;  %v500_v21 = vld [vmem:[%s672_s4] ss:$0 sm:$0xff] }
  0x12   : > { %514 = vmatpush3.msra.mxu0 %v304_v10 }
  0x13   : > { %515 = vmatprep.subr.mxu0 %v572_v8 }
  0x14   : > { %516 = vmatpush3.msra.mxu0 %v303_v11 }
  0x9a   : > { %v275_v2 = vpop.xlane.xlu0 %274 }
  0x9b   : > { %v277_v3 = vmul.f32 0.03125, %v275_v2 }
  0x9d   : > { %v278_v4 = vsub.f32 %v271_v0, %v277_v3 }
  0x9f   : > { %v279_v5 = vmul.f32 %v278_v4, %v278_v4 }
  0xa1   : > { %v280_v6 = vsel %vm272_vm0, %v279_v5, 0.0 }
  0xa2   : > { %281 = vadd.xlane.f32.xlu0 %v280_v6 }
 0x12b   : > { %v282_v12 = vpop.xlane.xlu0 %281 }
 0x12c   : > { %v283_v13 = vmul.f32 0.03125, %v282_v12 }
 0x12e   : > { %v284_v14 = vadd.f32 1e-05, %v283_v13 }
 0x130   : > { %546 = vrsqrt.f32 %v284_v14 }
 0x13d   : > { %v547_v15 = vpop.eup %546 }
 0x13e   : > { %v286_v17 = vmul.f32 %v547_v15, %v278_v4 }
 0x140   : > { %v294_v19 = vmul.f32 %v498_v16, %v286_v17 }
 0x142   : > { %v302_v20 = vadd.f32 %v499_v18, %v294_v19 }
 0x144   : > { %518 = vmatmul.mubr.msk.f32.vlgmr.msra.gmra.mxu0 %vm272_vm0, %v302_v20 }
 0x204   : > { %v383_v22 = vpop.f32.mrf.mxu0 }
 0x205   : > { %v384_v23 = vadd.f32 %v500_v21, %v383_v22 }
 0x206   : > { %v519_v24 = vpop.f32.mrf.mxu0 }
 0x207   : > { %v387_v25 = vmax.f32 %v384_v23, 0.0 }
 0x209   : > { %389 = vst.msk [vmem:[%s270_s17] sm:$0xff] %vm388_vm2, %v387_v25 }
 0x20a PF: > { %s15_s20 = sadd.s32 1, %s570_s20   ;;  %s674_s18 = smov %s566_s19 }
 0x20b   : > { %p12_p5 = scmp.ge.s32.totalorder %s15_s20, 4   ;;  %s675_s19 = smov %s677_s21 }
 0x20d   :  { %14 = sbr.rel (!%p12_p5) target bundleno = 2 (0x2), region = 76 }

// kernel: tf_encoder_forward.23
= control target key start
LH: loop header
LB: loop body
LE: loop exit
PB: predicated region body
PF: predicated region fallthrough
CT: control target
= control target key end

     0   :  { %8 = vsyncpa [#allocation3], 0  ;;  %s504_s0 = inlined_call_operand.vmem [shape: f32[16,32], index: 0, kind: input, shape index: {}]   ;;  %s505_s1 = inlined_call_operand.vmem [shape: f32[1,32], index: 1, kind: input, shape index: {}]   ;;  %s506_s2 = inlined_call_operand.vmem [shape: f32[1,32], index: 2, kind: input, shape index: {}]   ;;  %s507_s3 = inlined_call_operand.hbm [shape: f32[16,32], index: 3, kind: output, shape index: {}]  }
   0x1   :  { %10 = vsyncpa [#allocation3 + $0x1], 0  ;;  %s408_s12 = smov 0   ;;  %s410_s13 = smov 0  }
   0x2   :  { %s412_s14 = smov 0   ;;  %s414_s15 = smov 0  }
   0x3 LB: > { %s429_s16 = sadd.s32 4294967295, %s385_s15   ;;  %s272_s17 = sadd.s32 4294967294, %s385_s15   ;;  %s385_s15 = sphi %s414_s15, %s513_s15   ;;  %s381_s14 = sphi %s412_s14, %s512_s14   ;;  %s377_s13 = sphi %s410_s13, %s511_s13   ;;  %s373_s12 = sphi %s408_s12, %s510_s12  }
   0x4   : > { %s433_s18 = sadd.s32 1, %s385_s15   ;;  %s91_s19 = sadd.s32 1, %s381_s14 }
   0x5   : > { %s88_s20 = ssub.s32 %s385_s15, %s433_s18  ;;  %p101_p0 = scmp.ne.s32.totalorder %s381_s14, %s377_s13 }
   0x6   : > { %p89_p1 = scmp.eq.s32.totalorder %s88_s20, 0  ;;  %p102_p2 = scmp.eq.s32.totalorder %s429_s16, 1 }
   0x7   : > { %p107_p3 = scmp.ne.s32.totalorder %s377_s13, %s373_s12  ;;  %p108_p4 = scmp.eq.s32.totalorder %s272_s17, 1 }
   0x8   : > { %s444_s21 = scalar_select %p89_p1, %s381_s14, %s91_s19  }
   0x9   : > { %p446_p5 = por %p102_p2, %p101_p0  ;;  %p450_p6 = por %p108_p4, %p107_p3 }
   0xa   : > { %p275_p7 = scmp.ge.s32.totalorder %s385_s15, 1  ;;  %p139_p8 = scmp.lt.s32.totalorder %s385_s15, 3 }
   0xc   : > { %p140_p9 = pnand %p275_p7, %p139_p8 }
   0xd   : > { %p162_p10 = scmp.lt.s32.totalorder (!%p140_p9), %s429_s16, 1  ;;  %s159_s29 = sand.u32 (!%p140_p9), 1, %s377_s13  }
   0xe   : > { %143 = sbr.rel (%p140_p9) target bundleno = 345 (0x159), region = 32  ;;  %s276_s30 = sshll.u32 (!%p140_p9), %s159_s29, 3 }
   0xf   : > { %s281_s8 = sshll.u32 (!%p140_p9), %s429_s16, 7  ;;  %s161_s9 = scalar_lea.vmem (!%p140_p9), [#allocation2], %s276_s30 }
  0x10   : > { %s213_s10 = sshll.u32 (!%p140_p9), %s161_s9, 4  ;;  %s211_s19 = scalar_lea.hbm (!%p140_p9), %s507_s3, %s281_s8  ;;  %s214_s10 = int_to_ptr.vmem [resolvable:$true] %s213_s10 }
  0x11   : > { %s200_s20 = scalar_lea.sflag (!%p140_p9), [#allocation3], %s159_s29 }
  0x13   : > { %s163_s24 = scalar_select %p162_p10, %s429_s16, 1  ;;  %vm167_vm0 = vcmask 261120   ;;  %v278_v11 = vld [vmem:[%s505_s1] ss:$0 sm:$0xff] }
  0x14   : > { %v279_v13 = vld [vmem:[%s506_s2] ss:$0 sm:$0xff] }
  0x15   : > { %s277_s25 = sshll.u32 %s163_s24, 3  ;;  %s325_s24 = scalar_lea.vmem %s214_s10, 128 }
  0x16   : > { %s165_s28 = scalar_lea.vmem %s504_s0, %s277_s25  ;;  %p326_p11 = scmp.ne.s32.totalorder %s214_s10, %s325_s24 }
  0x17   : > { %v166_v0 = vld [vmem:[%s165_s28] sm:$0xff]  ;;  %s387_s25 = smov [#allocation2]  }
  0x18   : > { %v168_v1 = vsel %vm167_vm0, %v166_v0, 0.0  ;;  %p327_p12 = pnand %p326_p11, %p446_p5  ;;  %s329_s26 = sshll.u32 %s387_s25, 4  ;;  %s330_s26 = int_to_ptr.vmem [resolvable:$false] %s329_s26 }
  0x19   : > { %169 = vadd.xlane.f32.xlu0 %v168_v1  ;;  %s331_s16 = scalar_lea.vmem %s330_s26, 256  ;;  %p332_p0 = scmp.lt.s32.totalorder %s214_s10, %s330_s26 }
  0x1a   : > { %p328_p13 = pneg %p327_p12  ;;  %p333_p1 = scmp.lt.s32.totalorder %s331_s16, %s325_s24 }
  0x1c   : > { %p334_p2 = por %p333_p1, %p332_p0 }
  0x1e   : > { %p335_p3 = pnand %p334_p2, %p328_p13 }
  0xa2   : > { %v170_v2 = vpop.xlane.xlu0 %169 }
  0xa3   : > { %v172_v3 = vmul.f32 0.03125, %v170_v2 }
  0xa5   : > { %v173_v4 = vsub.f32 %v166_v0, %v172_v3 }
  0xa7   : > { %v174_v5 = vmul.f32 %v173_v4, %v173_v4 }
  0xa9   : > { %v175_v6 = vsel %vm167_vm0, %v174_v5, 0.0 }
  0xaa   : > { %176 = vadd.xlane.f32.xlu0 %v175_v6 }
 0x133   : > { %v177_v7 = vpop.xlane.xlu0 %176 }
 0x134   : > { %v178_v8 = vmul.f32 0.03125, %v177_v7 }
 0x136   : > { %v179_v9 = vadd.f32 1e-05, %v178_v8 }
 0x138   : > { %323 = vrsqrt.f32 %v179_v9 }
 0x145   : > { %v324_v10 = vpop.eup %323 }
 0x146   : > { %v181_v12 = vmul.f32 %v324_v10, %v173_v4 }
 0x148   : > { %v189_v14 = vmul.f32 %v278_v11, %v181_v12 }
 0x14a   : > { %v197_v15 = vadd.f32 %v279_v13, %v189_v14 }
 0x14c   : > { %198 = vst.msk [vmem:[%s161_s9] sm:$0xff] %vm167_vm0, %v197_v15 }
 0x14d   : > { %338 = shalt.err (!%p335_p3)
}
 0x14e   : > { %s339_s27 = scalar_lea.hbm %s211_s19, 128  ;;  %s343_s30 = scalar_lea.hbm %s507_s3, 256 }
 0x14f   : > { %p340_p4 = scmp.ne.s32.totalorder %s211_s19, %s339_s27  ;;  %p344_p9 = scmp.lt.s32.totalorder %s211_s19, %s507_s3 }
 0x150   : > { %p345_p10 = scmp.lt.s32.totalorder %s343_s30, %s339_s27 }
 0x151   : > { %p341_p7 = pnand %p340_p4, %p446_p5 }
 0x152   : > { %p346_p11 = por %p345_p10, %p344_p9 }
 0x153   : > { %p342_p8 = pneg %p341_p7 }
 0x155   : > { %p347_p12 = pnand %p346_p11, %p342_p8 }
 0x157   : > { %350 = shalt.err (!%p347_p12)
}
 0x158   : > { %284 = dma.vmem_to_hbm [thread:$0]  (%p446_p5), %s214_s10, 128, %s211_s19, %s200_s20  }
 0x159 PF: > { %p290_p13 = scmp.ge.s32.totalorder %s385_s15, 2  ;;  %s225_s6 = sand.u32 1, %s373_s12  }
 0x15a   : > { %s226_s7 = scalar_lea.sflag [#allocation3], %s225_s6 }
 0x15b   : > { %p287_p0 = pnand %p290_p13, %p450_p6 }
 0x15d   : > { %p288_p1 = pneg %p287_p0 }
 0x15f   : > { %368 = dma.done.wait (%p288_p1), %s226_s7, 128  }
 0x160   : > { %370 = vsyncadd (%p288_p1), %s226_s7, 4294967168  ;;  %p13_p2 = scmp.ge.s32.totalorder %s433_s18, 4   ;;  %s510_s12 = smov %s377_s13 }
 0x161   : > { %s511_s13 = smov %s381_s14  ;;  %s512_s14 = smov %s444_s21 }
 0x162   : > { %s513_s15 = smov %s433_s18  ;;  %15 = sbr.rel (!%p13_p2) target bundleno = 3 (0x3), region = 67 }
 0x167   :  { %231 = vsyncpa [#allocation3], 1 }
 0x168   :  { %233 = vsyncpa [#allocation3 + $0x1], 1 }

</bundles_post_ra>
